<compile_context>
chip_gen: v6e
topology: v6e:2x2x1
jax: 0.10.0
libtpu: 0.0.40
codegen_flags: <defaults>
</compile_context>

<pallas_src>
import functools
import math

import jax
import jax.numpy as jnp
from jax.experimental import pallas as pl
from jax.experimental.pallas import tpu as pltpu

EPSILON = 1e-07


def _hyper_kernel(src_ref, dst_ref, out_ref, *, d, k, epsilon):
    # src_ref/dst_ref: (TN, k*d) VMEM tiles; out_ref: (TN, k).
    # Each row of the tile holds k original rows of length d packed along the lane axis.
    u = src_ref[...].astype(jnp.float32)
    v = dst_ref[...].astype(jnp.float32)
    df = k * d

    # Constant 0/1 segment-sum matrix: seg[j, s] = 1 iff lane j belongs to segment s.
    # Built without integer division (range compare) to keep the lowering trivial.
    row = jax.lax.broadcasted_iota(jnp.int32, (df, k), 0)
    col = jax.lax.broadcasted_iota(jnp.int32, (df, k), 1)
    lo = col * d
    seg = ((row >= lo) & (row < lo + d)).astype(jnp.float32)

    def seg_sum(arr):
        # MXU segment reduction: (TN, df) @ (df, k) -> (TN, k).  The 0/1 matrix is
        # exact; HIGHEST precision keeps f32 accuracy for the f32 operand.
        return jnp.dot(arr, seg,
                       preferred_element_type=jnp.float32,
                       precision=jax.lax.Precision.HIGHEST)

    squnorm = seg_sum(u * u)            # (TN, k)
    sqvnorm = seg_sum(v * v)            # (TN, k)
    uv = seg_sum(u * v)                 # (TN, k)

    # ||u-v||^2 = ||u||^2 + ||v||^2 - 2<u,v>; clamp tiny negative rounding so that
    # x >= 1 + eps and sqrt(x^2 - 1) never sees a negative argument.
    sqdist = jnp.maximum(squnorm + sqvnorm - 2.0 * uv, 0.0)

    x = 1.0 + 2.0 * sqdist / ((1.0 - squnorm) * (1.0 - sqvnorm)) + epsilon
    z = jnp.sqrt(x * x - 1.0)           # matches the PyTorch module exactly
    out_ref[...] = jnp.log(x + z).astype(out_ref.dtype)


def hyper_distance(src, dst, *, epsilon=EPSILON, max_tile_rows=1024):
    """Poincare distance along the last axis. src/dst: [..., D] -> [...]."""
    assert src.shape == dst.shape, "src/dst must have the same shape"
    orig_shape = src.shape
    D = orig_shape[-1]
    lead = orig_shape[:-1]
    N = 1
    for s in lead:
        N *= s

    # ---- Generalized lane folding: pack k consecutive rows per kernel row so the
    # packed width k*D is (close to) lane dense.  k is a power of two; shrink it to
    # divide N so no tail handling is needed.  Bounded so rows stay reasonably short.
    k_full = 128 // math.gcd(D, 128)
    if k_full > 1 and k_full * D <= 2048:
        k = k_full
    else:
        k = 1
    if N > 0:
        k = math.gcd(k, N)
    k = max(k, 1)
    M = N // k          # rows seen by the kernel
    Df = k * D          # packed (lane) width

    src2 = src.reshape(M, Df)   # contiguous row-major reshape: no data movement
    dst2 = dst.reshape(M, Df)

    # ---- Row-tile sizing: count BOTH the double-buffered input blocks (in the input
    # dtype) and the in-kernel f32 temporaries (u, v, one product + slack).  Keep the
    # total around 20 MiB so it fits comfortably on every generation (v5e/v6e/v7x)
    # with the explicit vmem_limit_bytes below.
    in_itemsize = jnp.dtype(src.dtype).itemsize
    bytes_per_row = (2 * 2 * Df * in_itemsize    # 2 inputs x 2 pipeline buffers
                     + 4 * Df * 4                # u, v, one product, slack (f32)
                     + 2 * 2 * k * 4)            # output buffers (tiny)
    vmem_budget = 20 * 1024 * 1024

    if M >= 8:
        tile_cap = max(vmem_budget // bytes_per_row, 8)
        tile_n = min(max_tile_rows, (tile_cap // 8) * 8, (M // 8) * 8)
        # Keep at least 2 grid steps so the "parallel" axis can be split across the
        # two TensorCores of a v7x chip.
        two_step = (((M + 1) // 2) + 7) // 8 * 8
        tile_n = max(8, min(tile_n, two_step))
    else:
        # Tiny problem: one block equal to the full array (block dim == array dim is legal).
        tile_n = M

    grid = (pl.cdiv(M, tile_n),)   # partial last block handled by Pallas (no jnp.pad)

    cost = pl.CostEstimate(
        flops=8 * N * D + 20 * N,
        transcendentals=3 * N,
        bytes_accessed=2 * N * D * in_itemsize + N * 4,
    )

    out = pl.pallas_call(
        functools.partial(_hyper_kernel, d=D, k=k, epsilon=epsilon),
        out_shape=jax.ShapeDtypeStruct((M, k), jnp.float32),
        grid_spec=pltpu.PrefetchScalarGridSpec(
            num_scalar_prefetch=0,
            grid=grid,
            in_specs=[
                pl.BlockSpec((tile_n, Df), lambda i: (i, 0)),
                pl.BlockSpec((tile_n, Df), lambda i: (i, 0)),
            ],
            out_specs=pl.BlockSpec((tile_n, k), lambda i: (i, 0)),
        ),
        compiler_params=pltpu.CompilerParams(
            dimension_semantics=("parallel",),      # lets v7x split grid steps across 2 TCs
            vmem_limit_bytes=32 * 1024 * 1024,      # sized usage <= ~20 MiB; <= physical everywhere
        ),
        cost_estimate=cost,
    )(src2, dst2)

    out = out.reshape(N)        # (M, k) -> (N,), row order preserved by construction
    return out.reshape(lead)


def _reference(src, dst, epsilon=EPSILON):
    u = src.astype(jnp.float32)
    v = dst.astype(jnp.float32)
    sqdist = jnp.sum((u - v) ** 2, axis=-1)
    squnorm = jnp.sum(u ** 2, axis=-1)
    sqvnorm = jnp.sum(v ** 2, axis=-1)
    x = 1.0 + 2.0 * sqdist / ((1.0 - squnorm) * (1.0 - sqvnorm)) + epsilon
    z = jnp.sqrt(x ** 2 - 1.0)
    return jnp.log(x + z)


if __name__ == "__main__":
    key = jax.random.PRNGKey(0)
    k1, k2 = jax.random.split(key)

    # Case 1: folded path (D=32 -> 4 rows packed per 128-lane row), multi-step grid.
    B, S, D = 2, 32, 32
    # Scale so all points lie well inside the Poincare ball (norm < 1).
    src = 0.05 * jax.random.normal(k1, (B, S, D), dtype=jnp.float32)
    dst = 0.05 * jax.random.normal(k2, (B, S, D), dtype=jnp.float32)

    out = jax.block_until_ready(hyper_distance(src, dst))
    ref = _reference(src, dst)
    assert out.shape == (B, S), f"unexpected output shape {out.shape}"
    assert jnp.allclose(out, ref, atol=2e-5, rtol=2e-5), "mismatch vs reference (folded)"

    # Case 2: D=160 -> generalized folding (k=2, Df=320) with a tiny row count.
    B2, S2, D2 = 2, 5, 160
    src2 = 0.05 * jax.random.normal(k1, (B2, S2, D2), dtype=jnp.float32)
    dst2 = 0.05 * jax.random.normal(k2, (B2, S2, D2), dtype=jnp.float32)
    out2 = jax.block_until_ready(hyper_distance(src2, dst2))
    ref2 = _reference(src2, dst2)
    assert out2.shape == (B2, S2), f"unexpected output shape {out2.shape}"
    assert jnp.allclose(out2, ref2, atol=2e-5, rtol=2e-5), "mismatch vs reference (generalized fold)"

    print("KERNEL_OK")
</pallas_src>

<mosaic_0001>
module attributes {stable_mosaic.version = 11 : i64} {
  func.func @_hyper_kernel(%arg0: i32, %arg1: memref<8x128xf32, #tpu.memory_space<vmem>>, %arg2: memref<8x128xf32, #tpu.memory_space<vmem>>, %arg3: memref<8x4xf32, #tpu.memory_space<vmem>>) attributes {dimension_semantics = [#tpu.dimension_semantics<parallel>], iteration_bounds = array<i64: 2>, scalar_prefetch = 0 : i64, scratch_operands = 0 : i64, tpu.core_type = #tpu.core_type<tc>, window_params = [{transform_indices = @transform_0, window_bounds = array<i64: 8, 128>}, {transform_indices = @transform_1, window_bounds = array<i64: 8, 128>}, {transform_indices = @transform_2, window_bounds = array<i64: 8, 4>}]} {
    %c0 = arith.constant 0 : index
    %c0_0 = arith.constant 0 : index
    %0 = vector.load %arg1[%c0, %c0_0] : memref<8x128xf32, #tpu.memory_space<vmem>>, vector<8x128xf32>
    %c0_1 = arith.constant 0 : index
    %c0_2 = arith.constant 0 : index
    %1 = vector.load %arg2[%c0_1, %c0_2] : memref<8x128xf32, #tpu.memory_space<vmem>>, vector<8x128xf32>
    %2 = tpu.iota {dimensions = array<i32: 0>} : vector<128x4xi32>
    %3 = tpu.iota {dimensions = array<i32: 1>} : vector<128x4xi32>
    %c32_i32 = arith.constant 32 : i32
    %4 = vector.broadcast %c32_i32 : i32 to vector<128x4xi32>
    %5 = arith.muli %3, %4 : vector<128x4xi32>
    %6 = arith.cmpi sge, %2, %5 : vector<128x4xi32>
    %c32_i32_3 = arith.constant 32 : i32
    %7 = vector.broadcast %c32_i32_3 : i32 to vector<128x4xi32>
    %8 = arith.addi %5, %7 : vector<128x4xi32>
    %9 = arith.cmpi slt, %2, %8 : vector<128x4xi32>
    %10 = arith.andi %6, %9 : vector<128x4xi1>
    %11 = arith.extui %10 : vector<128x4xi1> to vector<128x4xi32>
    %12 = arith.sitofp %11 : vector<128x4xi32> to vector<128x4xf32>
    %13 = arith.mulf %0, %0 : vector<8x128xf32>
    %cst = arith.constant dense<0.000000e+00> : vector<8x4xf32>
    %14 = tpu.matmul %13, %12, %cst {dimension_numbers = #tpu.dot_dimension_numbers<[1], [0], [0], [1], [0, 0, 1, 1], [], []>, precision = #tpu.contract_precision<fp32>} : vector<8x128xf32>, vector<128x4xf32>, vector<8x4xf32> -> vector<8x4xf32>
    %15 = arith.mulf %1, %1 : vector<8x128xf32>
    %cst_4 = arith.constant dense<0.000000e+00> : vector<8x4xf32>
    %16 = tpu.matmul %15, %12, %cst_4 {dimension_numbers = #tpu.dot_dimension_numbers<[1], [0], [0], [1], [0, 0, 1, 1], [], []>, precision = #tpu.contract_precision<fp32>} : vector<8x128xf32>, vector<128x4xf32>, vector<8x4xf32> -> vector<8x4xf32>
    %17 = arith.mulf %0, %1 : vector<8x128xf32>
    %cst_5 = arith.constant dense<0.000000e+00> : vector<8x4xf32>
    %18 = tpu.matmul %17, %12, %cst_5 {dimension_numbers = #tpu.dot_dimension_numbers<[1], [0], [0], [1], [0, 0, 1, 1], [], []>, precision = #tpu.contract_precision<fp32>} : vector<8x128xf32>, vector<128x4xf32>, vector<8x4xf32> -> vector<8x4xf32>
    %19 = arith.addf %14, %16 : vector<8x4xf32>
    %cst_6 = arith.constant 2.000000e+00 : f32
    %20 = vector.broadcast %cst_6 : f32 to vector<8x4xf32>
    %21 = arith.mulf %20, %18 : vector<8x4xf32>
    %22 = arith.subf %19, %21 : vector<8x4xf32>
    %cst_7 = arith.constant 0.000000e+00 : f32
    %23 = vector.broadcast %cst_7 : f32 to vector<8x4xf32>
    %24 = arith.maximumf %22, %23 : vector<8x4xf32>
    %cst_8 = arith.constant 2.000000e+00 : f32
    %25 = vector.broadcast %cst_8 : f32 to vector<8x4xf32>
    %26 = arith.mulf %25, %24 : vector<8x4xf32>
    %cst_9 = arith.constant 1.000000e+00 : f32
    %27 = vector.broadcast %cst_9 : f32 to vector<8x4xf32>
    %28 = arith.subf %27, %14 : vector<8x4xf32>
    %cst_10 = arith.constant 1.000000e+00 : f32
    %29 = vector.broadcast %cst_10 : f32 to vector<8x4xf32>
    %30 = arith.subf %29, %16 : vector<8x4xf32>
    %31 = arith.mulf %28, %30 : vector<8x4xf32>
    %32 = arith.divf %26, %31 : vector<8x4xf32>
    %cst_11 = arith.constant 1.000000e+00 : f32
    %33 = vector.broadcast %cst_11 : f32 to vector<8x4xf32>
    %34 = arith.addf %33, %32 : vector<8x4xf32>
    %cst_12 = arith.constant 1.000000e-07 : f32
    %35 = vector.broadcast %cst_12 : f32 to vector<8x4xf32>
    %36 = arith.addf %34, %35 : vector<8x4xf32>
    %37 = arith.mulf %36, %36 : vector<8x4xf32>
    %cst_13 = arith.constant 1.000000e+00 : f32
    %38 = vector.broadcast %cst_13 : f32 to vector<8x4xf32>
    %39 = arith.subf %37, %38 : vector<8x4xf32>
    %40 = math.sqrt %39 : vector<8x4xf32>
    %41 = arith.addf %36, %40 : vector<8x4xf32>
    %42 = math.log %41 : vector<8x4xf32>
    %c0_14 = arith.constant 0 : index
    %c0_15 = arith.constant 0 : index
    %43 = vector.load %arg3[%c0_14, %c0_15] : memref<8x4xf32, #tpu.memory_space<vmem>>, vector<8x4xf32>
    tpu.vector_store %arg3[%c0_14, %c0_15], %42 {strides = array<i32>} : memref<8x4xf32, #tpu.memory_space<vmem>>, vector<8x4xf32>,
    return
  }
  func.func @transform_0(%arg0: i32) -> (i32, i32) {
    %c0_i32 = arith.constant 0 : i32
    %c0_i32_0 = arith.constant 0 : i32
    return %arg0, %c0_i32 : i32, i32
  }
  func.func @transform_1(%arg0: i32) -> (i32, i32) {
    %c0_i32 = arith.constant 0 : i32
    %c0_i32_0 = arith.constant 0 : i32
    return %arg0, %c0_i32 : i32, i32
  }
  func.func @transform_2(%arg0: i32) -> (i32, i32) {
    %c0_i32 = arith.constant 0 : i32
    %c0_i32_0 = arith.constant 0 : i32
    return %arg0, %c0_i32 : i32, i32
  }
}

</mosaic_0001>

<bundles_post_ra>
// kernel: tpu_custom_call.1
= control target key start
LH: loop header
LB: loop body
LE: loop exit
PB: predicated region body
PF: predicated region fallthrough
CT: control target
= control target key end

     0   :  { %7 = vsyncpa [#allocation3], 0  ;;  %s5094_s0 = inlined_call_operand.hbm [shape: f32[16,128], index: 0, kind: input, shape index: {}]   ;;  %s5095_s1 = inlined_call_operand.hbm [shape: f32[16,128], index: 1, kind: input, shape index: {}]   ;;  %s5096_s2 = inlined_call_operand.vmem [shape: f32[16,4], index: 2, kind: output, shape index: {}]  }
   0x1   :  { %9 = vsyncpa [#allocation3 + $0x1], 0 }
   0x2   :  { %10 = vsyncpa [#allocation5], 0 }
   0x3   :  { %12 = vsyncpa [#allocation5 + $0x1], 0  ;;  %s3618_s9 = smov 0   ;;  %s3620_s10 = smov 0  }
   0x4   :  { %s3622_s11 = smov 0   ;;  %s3624_s12 = smov 0  }
   0x5 LB: > { %s3637_s13 = sadd.s32 4294967295, %s3596_s12   ;;  %s3640_s14 = sadd.s32 1, %s3596_s12   ;;  %s3596_s12 = sphi %s3624_s12, %s5227_s12   ;;  %s3592_s11 = sphi %s3622_s11, %s5226_s11   ;;  %s3588_s10 = sphi %s3620_s10, %s5225_s10   ;;  %s3584_s9 = sphi %s3618_s9, %s5224_s9  }
   0x6   : > { %s22_s15 = ssub.s32 %s3596_s12, %s3640_s14  ;;  %s25_s16 = sadd.s32 1, %s3592_s11 }
   0x7   : > { %p23_p0 = scmp.eq.s32.totalorder %s22_s15, 0  ;;  %p32_p1 = scmp.ne.s32.totalorder %s3592_s11, %s3588_s10 }
   0x8   : > { %p33_p2 = scmp.eq.s32.totalorder %s3596_s12, 0  ;;  %p38_p3 = scmp.ne.s32.totalorder %s3588_s10, %s3584_s9 }
   0x9   : > { %s3650_s17 = scalar_select %p23_p0, %s3592_s11, %s25_s16  }
   0xa   : > { %p34_p4 = por %p33_p2, %p32_p1  ;;  %p39_p5 = scmp.eq.s32.totalorder %s3637_s13, 0 }
   0xb   : > { %p3460_p6 = scmp.lt.s32.totalorder %s3596_s12, 2  ;;  %s3659_s19 = sand.u32 1, %s3592_s11  }
   0xc   : > { %p3654_p7 = por %p39_p5, %p38_p3  ;;  %s2342_s20 = sshll.u32 %s3659_s19, 3 }
   0xd   : > { %s2343_s21 = sshll.u32 %s3596_s12, 7  ;;  %s118_s25 = scalar_lea.vmem [#allocation2], %s2342_s20 }
   0xe   : > { %s5142_s18 = scalar_select %p3654_p7, 1, 0 }
   0xf   : > { %s3668_s24 = scalar_lea.hbm %s5094_s0, %s2343_s21  ;;  %s125_s26 = sshll.u32 %s118_s25, 4  ;;  %s3672_s26 = int_to_ptr.vmem [resolvable:$true] %s125_s26 }
  0x10   : > { %p3674_p8 = pnand %p3460_p6, %p34_p4  ;;  %s115_s28 = scalar_lea.sflag [#allocation3], %s3659_s19 }
  0x11   : > { %s3502_s29 = scalar_lea.hbm %s3668_s24, 128  ;;  %s3507_s4 = scalar_lea.hbm %s5094_s0, 256 }
  0x12   : > { %p3503_p11 = scmp.ne.s32.totalorder %s3668_s24, %s3502_s29  ;;  %p3504_p12 = pneg %p3674_p8 }
  0x13   : > { %p3508_p1 = scmp.lt.s32.totalorder %s3668_s24, %s5094_s0  ;;  %p3509_p2 = scmp.lt.s32.totalorder %s3507_s4, %s3502_s29 }
  0x14   : > { %p3505_p13 = pnand %p3504_p12, %p3503_p11 }
  0x15   : > { %p3510_p3 = por %p3509_p2, %p3508_p1 }
  0x16   : > { %p3506_p0 = pneg %p3505_p13 }
  0x18   : > { %p3511_p4 = pnand %p3510_p3, %p3506_p0 }
  0x1a   : > { %3514 = shalt.err (!%p3511_p4)
}
  0x1b   : > { %s3515_s7 = scalar_lea.vmem %s3672_s26, 128  ;;  %s3598_s8 = smov [#allocation2]  }
  0x1c   : > { %p3516_p5 = scmp.ne.s32.totalorder %s3672_s26, %s3515_s7  ;;  %s3520_s9 = sshll.u32 %s3598_s8, 4  ;;  %s3521_s9 = int_to_ptr.vmem [resolvable:$false] %s3520_s9 }
  0x1d   : > { %s3522_s15 = scalar_lea.vmem %s3521_s9, 256  ;;  %p3523_p13 = scmp.lt.s32.totalorder %s3672_s26, %s3521_s9 }
  0x1e   : > { %p3518_p6 = pnand %p3516_p5, %p3504_p12  ;;  %p3524_p9 = scmp.lt.s32.totalorder %s3522_s15, %s3515_s7 }
  0x20   : > { %p3519_p11 = pneg %p3518_p6  ;;  %p3525_p10 = por %p3524_p9, %p3523_p13 }
  0x22   : > { %p3526_p1 = pnand %p3525_p10, %p3519_p11 }
  0x24   : > { %3529 = shalt.err (!%p3526_p1)
}
  0x25   : > { %3456 = dma.hbm_to_vmem [thread:$0]  (!%p3674_p8), %s3668_s24, 128, %s3672_s26, %s115_s28  }
  0x26   : > { %p5144_p0 = scmp.lt.s32.totalorder %s3596_s12, 3  ;;  %p5145_p2 = scmp.ge.s32.totalorder %s3596_s12, 1 }
  0x27   : > { %s3718_s25 = scalar_lea.hbm %s5095_s1, %s2343_s21  ;;  %s136_s29 = scalar_lea.vmem [#allocation4], %s2342_s20 }
  0x28   : > { %p3709_p3 = pnand %p5145_p2, %p5144_p0  ;;  %s143_s30 = sshll.u32 %s136_s29, 4  ;;  %s144_s30 = int_to_ptr.vmem [resolvable:$true] %s143_s30 }
  0x29   : > { %s133_s24 = scalar_lea.sflag [#allocation5], %s3659_s19  ;;  %s3530_s26 = scalar_lea.hbm %s3718_s25, 128 }
  0x2a   : > { %s5146_s16 = scalar_select %p3709_p3, 1, 0 }
  0x2b   : > { %p3531_p9 = scmp.ne.s32.totalorder %s3718_s25, %s3530_s26  ;;  %s3535_s3 = scalar_lea.hbm %s5095_s1, 256 }
  0x2c   : > { %p3536_p5 = scmp.lt.s32.totalorder %s3718_s25, %s5095_s1  ;;  %p3537_p6 = scmp.lt.s32.totalorder %s3535_s3, %s3530_s26 }
  0x2d   : > { %p3533_p10 = pnand %p3531_p9, %p3504_p12 }
  0x2e   : > { %p3538_p11 = por %p3537_p6, %p3536_p5 }
  0x2f   : > { %p3534_p4 = pneg %p3533_p10 }
  0x31   : > { %p3539_p13 = pnand %p3538_p11, %p3534_p4 }
  0x33   : > { %3542 = shalt.err (!%p3539_p13)
}
  0x34   : > { %s3543_s20 = scalar_lea.vmem %s144_s30, 128  ;;  %s3599_s19 = smov [#allocation4]  }
  0x35   : > { %p3544_p1 = scmp.ne.s32.totalorder %s144_s30, %s3543_s20  ;;  %s3548_s5 = sshll.u32 %s3599_s19, 4  ;;  %s3549_s5 = int_to_ptr.vmem [resolvable:$false] %s3548_s5 }
  0x36   : > { %s3550_s6 = scalar_lea.vmem %s3549_s5, 256  ;;  %p3551_p9 = scmp.lt.s32.totalorder %s144_s30, %s3549_s5 }
  0x37   : > { %p3546_p0 = pnand %p3544_p1, %p3504_p12  ;;  %p3552_p10 = scmp.lt.s32.totalorder %s3550_s6, %s3543_s20 }
  0x39   : > { %p3547_p2 = pneg %p3546_p0  ;;  %p3553_p7 = por %p3552_p10, %p3551_p9 }
  0x3b   : > { %p3554_p3 = pnand %p3553_p7, %p3547_p2 }
  0x3d   : > { %3557 = shalt.err (!%p3554_p3)
}
  0x3e   : > { %3459 = dma.hbm_to_vmem [thread:$0]  (!%p3674_p8), %s3718_s25, 128, %s144_s30, %s133_s24  }
  0x3f   : > { %p5147_p4 = scmp.ne.s32.totalorder %s5146_s16, 0 }
  0x41   : > { %152 = sbr.rel (%p5147_p4) target bundleno = 649 (0x289), region = 28 }
  0x46   : > { %s154_s7 = sand.u32 1, %s3588_s10   ;;  %p5148_p12 = scmp.ne.s32.totalorder %s5142_s18, 0 }
  0x47   : > { %s2347_s8 = sshll.u32 %s154_s7, 3  ;;  %s155_s9 = scalar_lea.sflag [#allocation3], %s154_s7 }
  0x48   : > { %s3744_s15 = scalar_lea.vmem [#allocation2], %s2347_s8 }
  0x49   : > { %3575 = dma.done.wait (%p5148_p12), %s155_s9, 128  }
  0x4a   : > { %3577 = vsyncadd (%p5148_p12), %s155_s9, 4294967168  ;;  %s164_s22 = scalar_lea.sflag [#allocation5], %s154_s7  ;;  %s3750_s27 = scalar_lea.vmem [#allocation4], %s2347_s8  ;;  %v198_v0 = vlaneseq }
  0x4b   : > { %3579 = dma.done.wait (%p5148_p12), %s164_s22, 128  }
  0x4c   : > { %3581 = vsyncadd (%p5148_p12), %s164_s22, 4294967168  ;;  %v3600_v1 = vmov 0.0   ;;  %v3758_v2 = vshrl.u32 %v198_v0, 7  ;;  %v216_v3 = vand.u32 127, %v198_v0  ;;  %vm5098_vm0 = vmmov 0   ;;  %p192_p7 = scmp.lt.s32.totalorder %s3637_s13, 1 }
  0x4d   : > { %2819 = vmatprep.subr.mxu0 %v3600_v1  ;;  %2854 = vmatprep.subr.mxu1 %v3600_v1  ;;  %v5149_v13 = vmov 0  ;;  %v5108_v15 = vmov 1.0   ;;  %v5155_v24 = vmov 0  ;;  %v5159_v31 = vmov 0 }
  0x4e   : > { %2851 = vmatprep.mubr.msk.f32.mxu0 %vm5098_vm0, %v3600_v1  ;;  %2886 = vmatprep.mubr.msk.f32.mxu1 %vm5098_vm0, %v3600_v1  ;;  %v214_v4 = vadd.s32 120, %v3758_v2  ;;  %v3765_v5 = vmul.u32 32, %v216_v3  ;;  %v213_v6 = vadd.s32 112, %v3758_v2  ;;  %v212_v7 = vadd.s32 104, %v3758_v2  ;;  %s5229_s13 = smov (!%p192_p7, %s3637_s13), 1 }
  0x4f   : > { %v211_v8 = vadd.s32 96, %v3758_v2  ;;  %v210_v9 = vadd.s32 88, %v3758_v2  ;;  %v209_v10 = vadd.s32 80, %v3758_v2  ;;  %v208_v11 = vadd.s32 72, %v3758_v2  ;;  %s2349_s18 = sshll.u32 %s5229_s13, 3 }
  0x50   : > { %vm233_vm1 = vcmp.ge.s32.totalorder %v214_v4, %v3765_v5  ;;  %v3775_v12 = vadd.s32 32, %v3765_v5  ;;  %vm232_vm2 = vcmp.ge.s32.totalorder %v213_v6, %v3765_v5  ;;  %vm231_vm3 = vcmp.ge.s32.totalorder %v212_v7, %v3765_v5  ;;  %s195_s25 = scalar_lea.vmem %s5096_s2, %s2349_s18 }
  0x51   : > { %vm230_vm4 = vcmp.ge.s32.totalorder %v211_v8, %v3765_v5  ;;  %vm229_vm5 = vcmp.ge.s32.totalorder %v210_v9, %v3765_v5  ;;  %vm228_vm6 = vcmp.ge.s32.totalorder %v209_v10, %v3765_v5  ;;  %vm227_vm7 = vcmp.ge.s32.totalorder %v208_v11, %v3765_v5 }
  0x52   : > { %vm250_vm8 = vcmp.lt.s32.totalorder %v214_v4, %v3775_v12  ;;  %vm249_vm9 = vcmp.lt.s32.totalorder %v213_v6, %v3775_v12  ;;  %vm248_vm10 = vcmp.lt.s32.totalorder %v212_v7, %v3775_v12  ;;  %vm247_vm11 = vcmp.lt.s32.totalorder %v211_v8, %v3775_v12 }
  0x53   : > { %vm3787_vm12 = vmand %vm233_vm1, %vm250_vm8  ;;  %vm246_vm13 = vcmp.lt.s32.totalorder %v210_v9, %v3775_v12  ;;  %vm245_vm14 = vcmp.lt.s32.totalorder %v209_v10, %v3775_v12  ;;  %vm244_vm15 = vcmp.lt.s32.totalorder %v208_v11, %v3775_v12  ;;  %v207_v14 = vadd.s32 64, %v3758_v2 }
  0x54   : > { %v5150_v13 = vsel %vm3787_vm12, 4294967295, %v5149_v13  ;;  %2820 = vmatpush3.msk.msra.mxu0 %vm3787_vm12, %v5108_v15  ;;  %vm3800_vm0 = vmand %vm232_vm2, %vm249_vm9  ;;  %v2365_v17 = vsel %vm3787_vm12, 1.0, %v3600_v1  ;;  %v206_v18 = vadd.s32 56, %v3758_v2  ;;  %v205_v19 = vadd.s32 48, %v3758_v2 }
  0x55   : > { %v3810_v20 = vadd.s32 40, %v3758_v2  ;;  %2821 = vmatprep.subr.mxu0 %v3600_v1  ;;  %vm3817_vm1 = vmand %vm231_vm3, %vm248_vm10  ;;  %v3821_v22 = vsub.f32 %v2365_v17, %v2365_v17  ;;  %v2364_v23 = vsel %vm3800_vm0, 1.0, %v3600_v1  ;;  %vm226_vm2 = vcmp.ge.s32.totalorder %v207_v14, %v3765_v5 }
  0x56   : > { %vm243_vm8 = vcmp.lt.s32.totalorder %v207_v14, %v3775_v12  ;;  %2822 = vmatpush3.msk.msra.mxu0 %vm3800_vm0, %v5108_v15  ;;  %vm3835_vm3 = vmand %vm230_vm4, %vm247_vm11  ;;  %v3839_v25 = vsub.f32 %v2364_v23, %v2364_v23  ;;  %v2363_v26 = vsel %vm3817_vm1, 1.0, %v3600_v1  ;;  %vm225_vm9 = vcmp.ge.s32.totalorder %v206_v18, %v3765_v5 }
  0x57   : > { %v5156_v24 = vsel %vm3835_vm3, 4294967295, %v5155_v24  ;;  %vm242_vm10 = vcmp.lt.s32.totalorder %v206_v18, %v3775_v12  ;;  %2823 = vmatprep.subr.mxu0 %v3600_v1  ;;  %vm3851_vm4 = vmand %vm229_vm5, %vm246_vm13  ;;  %v3856_v28 = vand.u32 4294901760, %v3821_v22  ;;  %v3858_v29 = vsub.f32 %v2363_v26, %v2363_v26 }
  0x58   : > { %v2362_v30 = vsel %vm3835_vm3, 1.0, %v3600_v1  ;;  %vm224_vm11 = vcmp.ge.s32.totalorder %v205_v19, %v3765_v5  ;;  %2824 = vmatpush3.msk.msra.mxu0 %vm3817_vm1, %v5108_v15  ;;  %vm3871_vm5 = vmand %vm228_vm6, %vm245_vm14  ;;  %v3876_v32 = vand.u32 4294901760, %v3839_v25  ;;  %v2361_v34 = vsel %vm3851_vm4, 1.0, %v3600_v1 }
  0x59   : > { %v5160_v31 = vsel %vm3871_vm5, 4294967295, %v5159_v31  ;;  %v3878_v33 = vsub.f32 %v2362_v30, %v2362_v30  ;;  %vm241_vm13 = vcmp.lt.s32.totalorder %v205_v19, %v3775_v12  ;;  %2825 = vmatprep.subr.mxu0 %v3600_v1  ;;  %v395_v35 = vsub.f32 %v3821_v22, %v3856_v28  ;;  %vm3891_vm6 = vmand %vm227_vm7, %vm244_vm15 }
  0x5a   : > { %v5161_v36 = vmov 0  ;;  %v3896_v37 = vand.u32 4294901760, %v3858_v29  ;;  %v3898_v38 = vsub.f32 %v2361_v34, %v2361_v34  ;;  %v2360_v39 = vsel %vm3871_vm5, 1.0, %v3600_v1  ;;  %2826 = vmatpush3.msk.msra.mxu0 %vm3835_vm3, %v5108_v15  ;;  %vm3924_vm14 = vmand %vm226_vm2, %vm243_vm8  ;;  %v196_v34 = vld [vmem:[%s3744_s15] sm:$0xff] }
  0x5b   : > { %v5162_v36 = vsel %vm3891_vm6, 4294967295, %v5161_v36  ;;  %v402_v40 = vsub.f32 %v3839_v25, %v3876_v32  ;;  %v3909_v41 = vand.u32 4294901760, %v3878_v33  ;;  %v3911_v42 = vsub.f32 %v2360_v39, %v2360_v39  ;;  %2827 = vmatprep.subr.mxu0 %v3600_v1  ;;  %vm3954_vm2 = vmand %vm225_vm9, %vm242_vm10 }
  0x5c   : > { %vm223_vm7 = vcmp.ge.s32.totalorder %v3810_v20, %v3765_v5  ;;  %v3916_v43 = vand.u32 4294901760, %v395_v35  ;;  %v409_v44 = vsub.f32 %v3858_v29, %v3896_v37  ;;  %v5163_v45 = vmov 0  ;;  %2828 = vmatpush3.msk.msra.mxu0 %vm3851_vm4, %v5108_v15  ;;  %vm3973_vm8 = vmand %vm224_vm11, %vm241_vm13 }
  0x5d   : > { %v5164_v45 = vsel %vm3924_vm14, 4294967295, %v5163_v45  ;;  %v3929_v46 = vand.u32 4294901760, %v3898_v38  ;;  %vm240_vm15 = vcmp.lt.s32.totalorder %v3810_v20, %v3775_v12  ;;  %v3936_v47 = vand.u32 4294901760, %v402_v40  ;;  %2829 = vmatprep.subr.mxu0 %v3600_v1 }
  0x5e   : > { %v416_v48 = vsub.f32 %v3878_v33, %v3909_v41  ;;  %v3941_v49 = vand.u32 4294901760, %v3911_v42  ;;  %v2359_v50 = vsel %vm3891_vm6, 1.0, %v3600_v1  ;;  %2855 = vmatpush3.msra.mxu1 %v3916_v43  ;;  %v3948_v51 = vand.u32 4294901760, %v409_v44  ;;  %2830 = vmatpush3.msk.msra.mxu0 %vm3871_vm5, %v5108_v15  ;;  %vm4004_vm11 = vmand %vm223_vm7, %vm240_vm15 }
  0x5f   : > { %v5166_v52 = vmov 0  ;;  %v423_v53 = vsub.f32 %v3898_v38, %v3929_v46  ;;  %v3960_v54 = vsub.f32 %v2359_v50, %v2359_v50  ;;  %v203_v55 = vadd.s32 32, %v3758_v2  ;;  %2856 = vmatprep.subr.mxu1 %v3600_v1  ;;  %2831 = vmatprep.subr.mxu0 %v3600_v1 }
  0x60   : > { %5165 = vst [vmem:[#allocation8_spill] sm:$0xff] %v3948_v51  ;;  %v5167_v52 = vsel %vm3954_vm2, 4294967295, %v5166_v52  ;;  %v3967_v56 = vand.u32 4294901760, %v416_v48  ;;  %v5169_v57 = vmov 0  ;;  %v430_v58 = vsub.f32 %v3911_v42, %v3941_v49  ;;  %2857 = vmatpush3.msra.mxu1 %v3936_v47  ;;  %2832 = vmatpush3.msk.msra.mxu0 %vm3891_vm6, %v5108_v15 }
  0x61   : > { %v5170_v57 = vsel %vm3973_vm8, 4294967295, %v5169_v57  ;;  %v2358_v59 = vsel %vm3924_vm14, 1.0, %v3600_v1  ;;  %v202_v60 = vadd.s32 24, %v3758_v2  ;;  %v3985_v61 = vand.u32 4294901760, %v423_v53  ;;  %2858 = vmatprep.subr.mxu1 %v3600_v1  ;;  %2833 = vmatprep.subr.mxu0 %v3600_v1  ;;  %v4105_v53 = vld [vmem:[%s3750_s27] sm:$0xff] }
  0x62   : > { %5168 = vst [vmem:[#allocation9_spill] sm:$0xff] %v3967_v56  ;;  %v3988_v62 = vand.u32 4294901760, %v3960_v54  ;;  %vm239_vm10 = vcmp.lt.s32.totalorder %v203_v55, %v3775_v12  ;;  %v3996_v63 = vand.u32 4294901760, %v430_v58  ;;  %v4008_v3 = vsub.f32 %v2358_v59, %v2358_v59  ;;  %2859 = vmatpush3.msra.mxu1 %v3948_v51  ;;  %2834 = vmatpush3.msk.msra.mxu0 %vm3924_vm14, %v5108_v15 }
  0x63   : > { %5171 = vst [vmem:[#allocation10_spill] sm:$0xff] %v3985_v61  ;;  %vm221_vm13 = vcmp.ge.s32.totalorder %v202_v60, %v3765_v5  ;;  %vm238_vm9 = vcmp.lt.s32.totalorder %v202_v60, %v3775_v12  ;;  %v2357_v6 = vsel %vm3954_vm2, 1.0, %v3600_v1  ;;  %v201_v7 = vadd.s32 16, %v3758_v2  ;;  %2860 = vmatprep.subr.mxu1 %v3600_v1  ;;  %2835 = vmatprep.subr.mxu0 %v3600_v1 }
  0x64   : > { %5172 = vst [vmem:[#allocation11_spill] sm:$0xff] %v3996_v63  ;;  %v437_v4 = vsub.f32 %v3960_v54, %v3988_v62  ;;  %v2356_v8 = vsel %vm3973_vm8, 1.0, %v3600_v1  ;;  %vm5175_vm7 = vcmp.ge.s32.totalorder %v203_v55, %v3765_v5  ;;  %v4036_v10 = vand.u32 4294901760, %v4008_v3  ;;  %2861 = vmatpush3.msra.mxu1 %v3967_v56  ;;  %2836 = vmatpush3.msk.msra.mxu0 %vm3954_vm2, %v5108_v15  ;;  %vm4062_vm14 = vmand %vm221_vm13, %vm238_vm9 }
  0x65   : > { %vm4031_vm15 = vmand %vm5175_vm7, %vm239_vm10  ;;  %v4038_v11 = vsub.f32 %v2357_v6, %v2357_v6  ;;  %v4040_v14 = vsub.f32 %v2356_v8, %v2356_v8  ;;  %v200_v17 = vadd.s32 8, %v3758_v2  ;;  %vm220_vm10 = vcmp.ge.s32.totalorder %v201_v7, %v3765_v5  ;;  %2862 = vmatprep.subr.mxu1 %v3600_v1  ;;  %2837 = vmatprep.subr.mxu0 %v3600_v1 }
  0x66   : > { %v4045_v18 = vand.u32 4294901760, %v437_v4  ;;  %vm237_vm7 = vcmp.lt.s32.totalorder %v201_v7, %v3775_v12  ;;  %v2355_v19 = vsel %vm4004_vm11, 1.0, %v3600_v1  ;;  %v444_v20 = vsub.f32 %v4008_v3, %v4036_v10  ;;  %2863 = vmatpush3.msra.mxu1 %v3985_v61  ;;  %2838 = vmatpush3.msk.msra.mxu0 %vm3973_vm8, %v5108_v15 }
  0x67   : > { %v5179_v23 = vmov 0  ;;  %v4067_v26 = vand.u32 4294901760, %v4038_v11  ;;  %v4070_v30 = vand.u32 4294901760, %v4040_v14  ;;  %vm219_vm2 = vcmp.ge.s32.totalorder %v200_v17, %v3765_v5  ;;  %vm4076_vm6 = vmand %vm220_vm10, %vm237_vm7  ;;  %2864 = vmatprep.subr.mxu1 %v3600_v1  ;;  %2839 = vmatprep.subr.mxu0 %v3600_v1 }
  0x68   : > { %5178 = vst [vmem:[#allocation12_spill] sm:$0xff] %v4045_v18  ;;  %v5180_v23 = vsel %vm4062_vm14, 4294967295, %v5179_v23  ;;  %vm236_vm9 = vcmp.lt.s32.totalorder %v200_v17, %v3775_v12  ;;  %v4081_v39 = vsub.f32 %v2355_v19, %v2355_v19  ;;  %vm218_vm13 = vcmp.ge.s32.totalorder %v3758_v2, %v3765_v5  ;;  %2865 = vmatpush3.msra.mxu1 %v3996_v63 }
  0x69   : > { %v2354_v40 = vsel %vm4031_vm15, 1.0, %v3600_v1  ;;  %v4092_v44 = vand.u32 4294901760, %v444_v20  ;;  %v451_v48 = vsub.f32 %v4038_v11, %v4067_v26  ;;  %v458_v50 = vsub.f32 %v4040_v14, %v4070_v30  ;;  %vm4098_vm10 = vmand %vm219_vm2, %vm236_vm9  ;;  %2840 = vmatpush3.msk.msra.mxu0 %vm4004_vm11, %v5108_v15  ;;  %2866 = vmatprep.subr.mxu1 %v3600_v1 }
  0x6a   : > { %v5184_v5 = vmov 0  ;;  %vm235_vm7 = vcmp.lt.s32.totalorder %v3758_v2, %v3775_v12  ;;  %v4110_v55 = vand.u32 4294901760, %v4081_v39  ;;  %v5186_v58 = vmov 0  ;;  %2841 = vmatprep.subr.mxu0 %v3600_v1  ;;  %2867 = vmatpush3.msra.mxu1 %v4045_v18 }
  0x6b   : > { %5183 = vst [vmem:[#allocation13_spill] sm:$0xff] %v4092_v44  ;;  %v5185_v5 = vsel %vm4098_vm10, 4294967295, %v5184_v5  ;;  %vm4112_vm8 = vmand %vm218_vm13, %vm235_vm7  ;;  %v4116_v59 = vsub.f32 %v2354_v40, %v2354_v40  ;;  %v299_v60 = vmul.f32 %v196_v34, %v196_v34  ;;  %v4119_v4 = vmul.f32 %v4105_v53, %v196_v34  ;;  %2842 = vmatpush3.msk.msra.mxu0 %vm4031_vm15, %v5108_v15 }
  0x6c   : > { %v5187_v58 = vsel %vm4112_vm8, 4294967295, %v5186_v58  ;;  %v2353_v2 = vsel %vm4062_vm14, 1.0, %v3600_v1  ;;  %v2352_v12 = vsel %vm4076_vm6, 1.0, %v3600_v1  ;;  %v4133_v6 = vand.u32 4294901760, %v451_v48  ;;  %2868 = vmatprep.subr.mxu1 %v3600_v1  ;;  %2843 = vmatprep.subr.mxu0 %v3600_v1 }
  0x6d   : > { %5188 = vst [vmem:[#allocation14_spill] sm:$0xff] %v4119_v4  ;;  %v465_v7 = vsub.f32 %v4081_v39, %v4110_v55  ;;  %v4138_v8 = vand.u32 4294901760, %v4116_v59  ;;  %v4140_v17 = vand.u32 4294901760, %v299_v60  ;;  %v4146_v19 = vsub.f32 %v2353_v2, %v2353_v2  ;;  %2869 = vmatpush3.msra.mxu1 %v4092_v44 }
  0x6e   : > { %5189 = vst [vmem:[#allocation15_spill] sm:$0xff] %v4133_v6  ;;  %v4148_v20 = vsub.f32 %v2352_v12, %v2352_v12  ;;  %v2351_v34 = vsel %vm4098_vm10, 1.0, %v3600_v1  ;;  %v2350_v40 = vsel %vm4112_vm8, 1.0, %v3600_v1  ;;  %v4158_v48 = vand.u32 4294901760, %v458_v50  ;;  %2870 = vmatprep.subr.mxu1 %v3600_v1 }
  0x6f   : > { %v472_v2 = vsub.f32 %v4116_v59, %v4138_v8  ;;  %v4163_v12 = vsub.f32 %v299_v60, %v4140_v17  ;;  %v4165_v15 = vsub.f32 %v2351_v34, %v2351_v34  ;;  %v5191_v4 = vmov 1.0   ;;  %2871 = vmatpush3.msra.mxu1 %v4133_v6 }
  0x70   : > { %5190 = vst [vmem:[#allocation16_spill] sm:$0xff] %v4158_v48  ;;  %2844 = vmatpush3.msk.msra.mxu0 %vm4062_vm14, %v5191_v4  ;;  %v4172_v18 = vand.u32 4294901760, %v4146_v19  ;;  %v4175_v50 = vand.u32 4294901760, %v4148_v20  ;;  %v4177_v44 = vsub.f32 %v2350_v40, %v2350_v40  ;;  %v4181_v60 = vand.u32 4294901760, %v465_v7  ;;  %2872 = vmatprep.subr.mxu1 %v3600_v1 }
  0x71   : > { %2845 = vmatprep.subr.mxu0 %v3600_v1  ;;  %v5125_v34 = vand.u32 4294901760, %v4163_v12  ;;  %v4185_v63 = vand.u32 4294901760, %v4165_v15  ;;  %2873 = vmatpush3.msra.mxu1 %v4158_v48  ;;  %v4195_v7 = vand.u32 4294901760, %v472_v2  ;;  %vm5193_vm2 = vnez %v5162_v36 }
  0x72   : > { %2846 = vmatpush3.msk.msra.mxu0 %vm4076_vm6, %v5191_v4  ;;  %v479_v40 = vsub.f32 %v4146_v19, %v4172_v18  ;;  %v486_v61 = vsub.f32 %v4148_v20, %v4175_v50  ;;  %v4203_v56 = vand.u32 4294901760, %v4177_v44  ;;  %2874 = vmatprep.subr.mxu1 %v3600_v1  ;;  %vm5194_vm9 = vnez %v5164_v45 }
  0x73   : > { %2847 = vmatprep.subr.mxu0 %v3600_v1  ;;  %v384_v6 = vsub.f32 %v4163_v12, %v5125_v34  ;;  %2875 = vmatpush3.msra.mxu1 %v4181_v60  ;;  %v493_v34 = vsub.f32 %v4165_v15, %v4185_v63  ;;  %vm5195_vm13 = vnez %v5167_v52  ;;  %vm5196_vm7 = vnez %v5170_v57 }
  0x74   : > { %5192 = vst [vmem:[#allocation17_spill] sm:$0xff] %v4203_v56  ;;  %2848 = vmatpush3.msk.msra.mxu0 %vm4098_vm10, %v5191_v4  ;;  %v4211_v48 = vand.u32 4294901760, %v479_v40  ;;  %2876 = vmatprep.subr.mxu1 %v3600_v1  ;;  %v4221_v51 = vand.u32 4294901760, %v486_v61 }
  0x75   : > { %2849 = vmatprep.subr.mxu0 %v3600_v1  ;;  %v385_v2 = vand.u32 4294901760, %v384_v6  ;;  %2877 = vmatpush3.msra.mxu1 %v4195_v7  ;;  %v500_v6 = vsub.f32 %v4177_v44, %v4203_v56  ;;  %v4228_v40 = vand.u32 4294901760, %v493_v34  ;;  %v5198_v34 = vand.u32 4294901760, %v4163_v12 }
  0x76   : > { %2850 = vmatpush3.msk.msra.mxu0 %vm4112_vm8, %v5191_v4  ;;  %2878 = vmatprep.subr.mxu1 %v3600_v1 }
  0x77   : > { %2889 = vmatprep.subr.mxu0 %v3600_v1  ;;  %2852 = vmatmul.mubr.f32.vlgmr.msra.gmra.mxu0 %v385_v2  ;;  %v4234_v61 = vand.u32 4294901760, %v500_v6  ;;  %v5202_v2 = vld [vmem:[#allocation9_spill] sm:$0xff] }
  0x78   : > { %2890 = vmatpush3.msra.mxu0 %v3821_v22  ;;  %2879 = vmatpush3.msra.mxu1 %v4211_v48 }
  0x79   : > { %2891 = vmatprep.subr.mxu0 %v3600_v1  ;;  %2880 = vmatprep.subr.mxu1 %v3600_v1 }
  0x7a   : > { %2892 = vmatpush3.msra.mxu0 %v3839_v25  ;;  %2881 = vmatpush3.msra.mxu1 %v4221_v51 }
  0x7b   : > { %2893 = vmatprep.subr.mxu0 %v3600_v1  ;;  %2882 = vmatprep.subr.mxu1 %v3600_v1  ;;  %v5222_v27 = vld [vmem:[#allocation17_spill] sm:$0xff] }
  0x7c   : > { %2894 = vmatpush3.msra.mxu0 %v3858_v29  ;;  %2883 = vmatpush3.msra.mxu1 %v4228_v40 }
  0x7d   : > { %2895 = vmatprep.subr.mxu0 %v3600_v1  ;;  %2884 = vmatprep.subr.mxu1 %v3600_v1 }
  0x7e   : > { %2896 = vmatpush3.msra.mxu0 %v3878_v33  ;;  %2885 = vmatpush3.msra.mxu1 %v4234_v61 }
  0x7f   : > { %2897 = vmatprep.subr.mxu0 %v3600_v1  ;;  %2887 = vmatmul.mubr.f32.vlgmr.msra.gmra.mxu1 %v4140_v17 }
  0x80   : > { %2898 = vmatpush3.msra.mxu0 %v3898_v38  ;;  %2924 = vmatprep.subr.mxu1 %v3600_v1 }
  0x81   : > { %2899 = vmatprep.subr.mxu0 %v3600_v1  ;;  %2925 = vmatpush3.msk.msra.mxu1 %vm3787_vm12, %v5191_v4 }
  0x82   : > { %2900 = vmatpush3.msra.mxu0 %v3911_v42  ;;  %2926 = vmatprep.subr.mxu1 %v3600_v1 }
  0x83   : > { %2901 = vmatprep.subr.mxu0 %v3600_v1  ;;  %2927 = vmatpush3.msk.msra.mxu1 %vm3800_vm0, %v5191_v4 }
  0x84   : > { %2902 = vmatpush3.msra.mxu0 %v3960_v54  ;;  %2928 = vmatprep.subr.mxu1 %v3600_v1 }
  0x85   : > { %2903 = vmatprep.subr.mxu0 %v3600_v1  ;;  %2929 = vmatpush3.msk.msra.mxu1 %vm3817_vm1, %v5191_v4 }
  0x86   : > { %2904 = vmatpush3.msra.mxu0 %v4008_v3  ;;  %2930 = vmatprep.subr.mxu1 %v3600_v1 }
  0x87   : > { %2905 = vmatprep.subr.mxu0 %v3600_v1  ;;  %2931 = vmatpush3.msk.msra.mxu1 %vm3835_vm3, %v5191_v4 }
  0x88   : > { %2906 = vmatpush3.msra.mxu0 %v4038_v11  ;;  %2932 = vmatprep.subr.mxu1 %v3600_v1 }
  0x89   : > { %2907 = vmatprep.subr.mxu0 %v3600_v1  ;;  %2933 = vmatpush3.msk.msra.mxu1 %vm3851_vm4, %v5191_v4 }
  0x8a   : > { %2908 = vmatpush3.msra.mxu0 %v4040_v14  ;;  %2934 = vmatprep.subr.mxu1 %v3600_v1 }
  0x8b   : > { %2909 = vmatprep.subr.mxu0 %v3600_v1  ;;  %2935 = vmatpush3.msk.msra.mxu1 %vm3871_vm5, %v5191_v4 }
  0x8c   : > { %2910 = vmatpush3.msra.mxu0 %v4081_v39  ;;  %2936 = vmatprep.subr.mxu1 %v3600_v1 }
  0x8d   : > { %2911 = vmatprep.subr.mxu0 %v3600_v1  ;;  %2937 = vmatpush3.msk.msra.mxu1 %vm5193_vm2, %v5191_v4 }
  0x8e   : > { %2912 = vmatpush3.msra.mxu0 %v4116_v59  ;;  %2938 = vmatprep.subr.mxu1 %v3600_v1 }
  0x8f   : > { %2913 = vmatprep.subr.mxu0 %v3600_v1  ;;  %2939 = vmatpush3.msk.msra.mxu1 %vm5194_vm9, %v5191_v4 }
  0x90   : > { %2914 = vmatpush3.msra.mxu0 %v4146_v19  ;;  %2940 = vmatprep.subr.mxu1 %v3600_v1 }
  0x91   : > { %2915 = vmatprep.subr.mxu0 %v3600_v1  ;;  %2941 = vmatpush3.msk.msra.mxu1 %vm5195_vm13, %v5191_v4  ;;  %vm5197_vm13 = vmmov 0  }
  0x92   : > { %2916 = vmatpush3.msra.mxu0 %v4148_v20  ;;  %2942 = vmatprep.subr.mxu1 %v3600_v1 }
  0x93   : > { %2917 = vmatprep.subr.mxu0 %v3600_v1  ;;  %2943 = vmatpush3.msk.msra.mxu1 %vm5196_vm7, %v5191_v4 }
  0x94   : > { %2918 = vmatpush3.msra.mxu0 %v4165_v15  ;;  %2944 = vmatprep.subr.mxu1 %v3600_v1 }
  0x95   : > { %2919 = vmatprep.subr.mxu0 %v3600_v1  ;;  %2945 = vmatpush3.msk.msra.mxu1 %vm4004_vm11, %v5191_v4 }
  0x96   : > { %2920 = vmatpush3.msra.mxu0 %v4177_v44  ;;  %2921 = vmatprep.mubr.msk.f32.mxu0 %vm5197_vm13, %v3600_v1 }
  0x97   : > { %2946 = vmatprep.subr.mxu1 %v3600_v1  ;;  %2922 = vmatmul.mubr.f32.vlgmr.msra.gmra.mxu0 %v4163_v12  ;;  %v941_v12 = vmul.f32 %v4105_v53, %v4105_v53 }
  0x98   : > { %2947 = vmatpush3.msk.msra.mxu1 %vm4031_vm15, %v5191_v4  ;;  %2959 = vmatprep.subr.mxu0 %v3600_v1 }
  0x99   : > { %2948 = vmatprep.subr.mxu1 %v3600_v1  ;;  %2960 = vmatpush3.msra.mxu0 %v3856_v28  ;;  %v4477_v53 = vand.u32 4294901760, %v941_v12 }
  0x9a   : > { %2949 = vmatpush3.msk.msra.mxu1 %vm4062_vm14, %v5191_v4  ;;  %2961 = vmatprep.subr.mxu0 %v3600_v1 }
  0x9b   : > { %2950 = vmatprep.subr.mxu1 %v3600_v1  ;;  %2962 = vmatpush3.msra.mxu0 %v3876_v32  ;;  %v4492_v6 = vsub.f32 %v941_v12, %v4477_v53 }
  0x9c   : > { %2951 = vmatpush3.msk.msra.mxu1 %vm4076_vm6, %v5191_v4  ;;  %2963 = vmatprep.subr.mxu0 %v3600_v1 }
  0x9d   : > { %2952 = vmatprep.subr.mxu1 %v3600_v1  ;;  %2964 = vmatpush3.msra.mxu0 %v3896_v37  ;;  %v5132_v12 = vand.u32 4294901760, %v4492_v6 }
  0x9e   : > { %2953 = vmatpush3.msk.msra.mxu1 %vm4098_vm10, %v5191_v4  ;;  %2965 = vmatprep.subr.mxu0 %v3600_v1 }
  0x9f   : > { %2954 = vmatprep.subr.mxu1 %v3600_v1  ;;  %2966 = vmatpush3.msra.mxu0 %v3909_v41 }
  0xa0   : > { %2955 = vmatpush3.msk.msra.mxu1 %vm4112_vm8, %v5191_v4  ;;  %2956 = vmatprep.mubr.msk.f32.mxu1 %vm5197_vm13, %v3600_v1 }
  0xa1   : > { %2967 = vmatprep.subr.mxu0 %v3600_v1  ;;  %2957 = vmatmul.mubr.f32.vlgmr.msra.gmra.mxu1 %v5198_v34  ;;  %v5203_v34 = vld [vmem:[#allocation10_spill] sm:$0xff] }
  0xa2   : > { %2968 = vmatpush3.msra.mxu0 %v3929_v46  ;;  %2994 = vmatprep.subr.mxu1 %v3600_v1 }
  0xa3   : > { %2969 = vmatprep.subr.mxu0 %v3600_v1  ;;  %2995 = vmatpush3.msk.msra.mxu1 %vm3787_vm12, %v5191_v4 }
  0xa4   : > { %2970 = vmatpush3.msra.mxu0 %v3941_v49  ;;  %2996 = vmatprep.subr.mxu1 %v3600_v1 }
  0xa5   : > { %2971 = vmatprep.subr.mxu0 %v3600_v1  ;;  %2997 = vmatpush3.msk.msra.mxu1 %vm3800_vm0, %v5191_v4 }
  0xa6   : > { %2972 = vmatpush3.msra.mxu0 %v3988_v62  ;;  %2998 = vmatprep.subr.mxu1 %v3600_v1 }
  0xa7   : > { %2973 = vmatprep.subr.mxu0 %v3600_v1  ;;  %2999 = vmatpush3.msk.msra.mxu1 %vm3817_vm1, %v5191_v4 }
  0xa8   : > { %2974 = vmatpush3.msra.mxu0 %v4036_v10  ;;  %3000 = vmatprep.subr.mxu1 %v3600_v1 }
  0xa9   : > { %2975 = vmatprep.subr.mxu0 %v3600_v1  ;;  %3001 = vmatpush3.msk.msra.mxu1 %vm3835_vm3, %v5191_v4 }
  0xaa   : > { %2976 = vmatpush3.msra.mxu0 %v4067_v26  ;;  %3002 = vmatprep.subr.mxu1 %v3600_v1 }
  0xab   : > { %2977 = vmatprep.subr.mxu0 %v3600_v1  ;;  %3003 = vmatpush3.msk.msra.mxu1 %vm3851_vm4, %v5191_v4 }
  0xac   : > { %2978 = vmatpush3.msra.mxu0 %v4070_v30  ;;  %3004 = vmatprep.subr.mxu1 %v3600_v1 }
  0xad   : > { %2979 = vmatprep.subr.mxu0 %v3600_v1  ;;  %3005 = vmatpush3.msk.msra.mxu1 %vm3871_vm5, %v5191_v4  ;;  %vm5199_vm5 = vnez %v5167_v52 }
  0xae   : > { %2980 = vmatpush3.msra.mxu0 %v4110_v55  ;;  %3006 = vmatprep.subr.mxu1 %v3600_v1 }
  0xaf   : > { %2981 = vmatprep.subr.mxu0 %v3600_v1  ;;  %3007 = vmatpush3.msk.msra.mxu1 %vm5193_vm2, %v5191_v4 }
  0xb0   : > { %2982 = vmatpush3.msra.mxu0 %v4138_v8  ;;  %3008 = vmatprep.subr.mxu1 %v3600_v1 }
  0xb1   : > { %2983 = vmatprep.subr.mxu0 %v3600_v1  ;;  %3009 = vmatpush3.msk.msra.mxu1 %vm5194_vm9, %v5191_v4 }
  0xb2   : > { %2984 = vmatpush3.msra.mxu0 %v4172_v18  ;;  %3010 = vmatprep.subr.mxu1 %v3600_v1 }
  0xb3   : > { %2985 = vmatprep.subr.mxu0 %v3600_v1  ;;  %3011 = vmatpush3.msk.msra.mxu1 %vm5199_vm5, %v5191_v4 }
  0xb4   : > { %2986 = vmatpush3.msra.mxu0 %v4175_v50  ;;  %3012 = vmatprep.subr.mxu1 %v3600_v1 }
  0xb5   : > { %2987 = vmatprep.subr.mxu0 %v3600_v1  ;;  %3013 = vmatpush3.msk.msra.mxu1 %vm5196_vm7, %v5191_v4 }
  0xb6   : > { %2988 = vmatpush3.msra.mxu0 %v4185_v63  ;;  %3014 = vmatprep.subr.mxu1 %v3600_v1 }
  0xb7   : > { %2989 = vmatprep.subr.mxu0 %v3600_v1  ;;  %3015 = vmatpush3.msk.msra.mxu1 %vm4004_vm11, %v5191_v4 }
  0xb8   : > { %2990 = vmatpush3.msra.mxu0 %v4203_v56  ;;  %2991 = vmatprep.mubr.msk.f32.mxu0 %vm5197_vm13, %v3600_v1 }
  0xb9   : > { %3016 = vmatprep.subr.mxu1 %v3600_v1  ;;  %2992 = vmatmul.mubr.f32.vlgmr.msra.gmra.mxu0 %v4140_v17 }
  0xba   : > { %3017 = vmatpush3.msk.msra.mxu1 %vm4031_vm15, %v5191_v4  ;;  %3029 = vmatprep.subr.mxu0 %v3600_v1 }
  0xbb   : > { %3018 = vmatprep.subr.mxu1 %v3600_v1  ;;  %3030 = vmatpush3.msk.msra.mxu0 %vm3787_vm12, %v5191_v4 }
  0xbc   : > { %3019 = vmatpush3.msk.msra.mxu1 %vm4062_vm14, %v5191_v4  ;;  %3031 = vmatprep.subr.mxu0 %v3600_v1 }
  0xbd   : > { %3020 = vmatprep.subr.mxu1 %v3600_v1  ;;  %3032 = vmatpush3.msk.msra.mxu0 %vm3800_vm0, %v5191_v4 }
  0xbe   : > { %3021 = vmatpush3.msk.msra.mxu1 %vm4076_vm6, %v5191_v4  ;;  %3033 = vmatprep.subr.mxu0 %v3600_v1 }
  0xbf   : > { %3022 = vmatprep.subr.mxu1 %v3600_v1  ;;  %3034 = vmatpush3.msk.msra.mxu0 %vm3817_vm1, %v5191_v4 }
  0xc0   : > { %3023 = vmatpush3.msk.msra.mxu1 %vm4098_vm10, %v5191_v4  ;;  %3035 = vmatprep.subr.mxu0 %v3600_v1 }
  0xc1   : > { %3024 = vmatprep.subr.mxu1 %v3600_v1  ;;  %3036 = vmatpush3.msk.msra.mxu0 %vm3835_vm3, %v5191_v4  ;;  %vm5200_vm3 = vnez %v5160_v31 }
  0xc2   : > { %3025 = vmatpush3.msk.msra.mxu1 %vm4112_vm8, %v5191_v4  ;;  %3026 = vmatprep.mubr.msk.f32.mxu1 %vm5197_vm13, %v3600_v1 }
  0xc3   : > { %3037 = vmatprep.subr.mxu0 %v3600_v1  ;;  %3027 = vmatmul.mubr.f32.vlgmr.msra.gmra.mxu1 %v4140_v17  ;;  %v5201_v17 = vld [vmem:[#allocation8_spill] sm:$0xff] }
  0xc4   : > { %3038 = vmatpush3.msk.msra.mxu0 %vm3851_vm4, %v5191_v4  ;;  %3064 = vmatprep.subr.mxu1 %v3600_v1 }
  0xc5   : > { %3039 = vmatprep.subr.mxu0 %v3600_v1  ;;  %3065 = vmatpush3.msra.mxu1 %v3916_v43 }
  0xc6   : > { %3040 = vmatpush3.msk.msra.mxu0 %vm5200_vm3, %v5191_v4  ;;  %3066 = vmatprep.subr.mxu1 %v3600_v1 }
  0xc7   : > { %3041 = vmatprep.subr.mxu0 %v3600_v1  ;;  %3067 = vmatpush3.msra.mxu1 %v3936_v47 }
  0xc8   : > { %3042 = vmatpush3.msk.msra.mxu0 %vm5193_vm2, %v5191_v4  ;;  %3068 = vmatprep.subr.mxu1 %v3600_v1 }
  0xc9   : > { %3043 = vmatprep.subr.mxu0 %v3600_v1  ;;  %3069 = vmatpush3.msra.mxu1 %v5201_v17  ;;  %v5207_v17 = vld [vmem:[#allocation15_spill] sm:$0xff] }
  0xca   : > { %3044 = vmatpush3.msk.msra.mxu0 %vm5194_vm9, %v5191_v4  ;;  %3070 = vmatprep.subr.mxu1 %v3600_v1 }
  0xcb   : > { %3045 = vmatprep.subr.mxu0 %v3600_v1  ;;  %3071 = vmatpush3.msra.mxu1 %v5202_v2  ;;  %v5204_v2 = vld [vmem:[#allocation11_spill] sm:$0xff] }
  0xcc   : > { %3046 = vmatpush3.msk.msra.mxu0 %vm5199_vm5, %v5191_v4  ;;  %3072 = vmatprep.subr.mxu1 %v3600_v1 }
  0xcd   : > { %3047 = vmatprep.subr.mxu0 %v3600_v1  ;;  %3073 = vmatpush3.msra.mxu1 %v5203_v34  ;;  %v5205_v34 = vld [vmem:[#allocation12_spill] sm:$0xff] }
  0xce   : > { %3048 = vmatpush3.msk.msra.mxu0 %vm5196_vm7, %v5191_v4  ;;  %3074 = vmatprep.subr.mxu1 %v3600_v1 }
  0xcf   : > { %3049 = vmatprep.subr.mxu0 %v3600_v1  ;;  %3075 = vmatpush3.msra.mxu1 %v5204_v2  ;;  %v5206_v2 = vld [vmem:[#allocation13_spill] sm:$0xff] }
  0xd0   : > { %3050 = vmatpush3.msk.msra.mxu0 %vm4004_vm11, %v5191_v4  ;;  %3076 = vmatprep.subr.mxu1 %v3600_v1 }
  0xd1   : > { %3051 = vmatprep.subr.mxu0 %v3600_v1  ;;  %3077 = vmatpush3.msra.mxu1 %v5205_v34  ;;  %v1026_v34 = vsub.f32 %v4492_v6, %v5132_v12 }
  0xd2   : > { %3052 = vmatpush3.msk.msra.mxu0 %vm4031_vm15, %v5191_v4  ;;  %3078 = vmatprep.subr.mxu1 %v3600_v1 }
  0xd3   : > { %3053 = vmatprep.subr.mxu0 %v3600_v1  ;;  %3079 = vmatpush3.msra.mxu1 %v5206_v2  ;;  %v5208_v2 = vld [vmem:[#allocation16_spill] sm:$0xff]  ;;  %v1027_v12 = vand.u32 4294901760, %v1026_v34  ;;  %v5210_v34 = vand.u32 4294901760, %v4492_v6 }
  0xd4   : > { %3054 = vmatpush3.msk.msra.mxu0 %vm4062_vm14, %v5191_v4  ;;  %3080 = vmatprep.subr.mxu1 %v3600_v1 }
  0xd5   : > { %3055 = vmatprep.subr.mxu0 %v3600_v1  ;;  %3081 = vmatpush3.msra.mxu1 %v5207_v17 }
  0xd6   : > { %3056 = vmatpush3.msk.msra.mxu0 %vm4076_vm6, %v5191_v4  ;;  %3082 = vmatprep.subr.mxu1 %v3600_v1 }
  0xd7   : > { %3057 = vmatprep.subr.mxu0 %v3600_v1  ;;  %3083 = vmatpush3.msra.mxu1 %v5208_v2 }
  0xd8   : > { %3058 = vmatpush3.msk.msra.mxu0 %vm4098_vm10, %v5191_v4  ;;  %3084 = vmatprep.subr.mxu1 %v3600_v1 }
  0xd9   : > { %3059 = vmatprep.subr.mxu0 %v3600_v1  ;;  %3085 = vmatpush3.msra.mxu1 %v4181_v60 }
  0xda   : > { %3060 = vmatpush3.msk.msra.mxu0 %vm4112_vm8, %v5191_v4  ;;  %3086 = vmatprep.subr.mxu1 %v3600_v1 }
  0xdb   : > { %3061 = vmatprep.mubr.msk.f32.mxu0 %vm5197_vm13, %v3600_v1  ;;  %3087 = vmatpush3.msra.mxu1 %v4195_v7 }
  0xdc   : > { %3099 = vmatprep.subr.mxu0 %v3600_v1  ;;  %3062 = vmatmul.mubr.f32.vlgmr.msra.gmra.mxu0 %v1027_v12 }
  0xdd   : > { %3088 = vmatprep.subr.mxu1 %v3600_v1  ;;  %3100 = vmatpush3.msra.mxu0 %v3821_v22 }
  0xde   : > { %3089 = vmatpush3.msra.mxu1 %v4211_v48  ;;  %3101 = vmatprep.subr.mxu0 %v3600_v1 }
  0xdf   : > { %3090 = vmatprep.subr.mxu1 %v3600_v1  ;;  %3102 = vmatpush3.msra.mxu0 %v3839_v25 }
  0xe0   : > { %3091 = vmatpush3.msra.mxu1 %v4221_v51  ;;  %3103 = vmatprep.subr.mxu0 %v3600_v1 }
  0xe1   : > { %3092 = vmatprep.subr.mxu1 %v3600_v1  ;;  %3104 = vmatpush3.msra.mxu0 %v3858_v29 }
  0xe2   : > { %3093 = vmatpush3.msra.mxu1 %v4228_v40  ;;  %3105 = vmatprep.subr.mxu0 %v3600_v1 }
  0xe3   : > { %3094 = vmatprep.subr.mxu1 %v3600_v1  ;;  %3106 = vmatpush3.msra.mxu0 %v3878_v33 }
  0xe4   : > { %3095 = vmatpush3.msra.mxu1 %v4234_v61  ;;  %3096 = vmatprep.mubr.msk.f32.mxu1 %vm5197_vm13, %v3600_v1 }
  0xe5   : > { %3107 = vmatprep.subr.mxu0 %v3600_v1  ;;  %3097 = vmatmul.mubr.f32.vlgmr.msra.gmra.mxu1 %v4477_v53 }
  0xe6   : > { %3108 = vmatpush3.msra.mxu0 %v3898_v38  ;;  %3134 = vmatprep.subr.mxu1 %v3600_v1 }
  0xe7   : > { %3109 = vmatprep.subr.mxu0 %v3600_v1  ;;  %3135 = vmatpush3.msk.msra.mxu1 %vm3787_vm12, %v5191_v4  ;;  %vm5209_vm12 = vnez %v5156_v24 }
  0xe8   : > { %3110 = vmatpush3.msra.mxu0 %v3911_v42  ;;  %3136 = vmatprep.subr.mxu1 %v3600_v1 }
  0xe9   : > { %3111 = vmatprep.subr.mxu0 %v3600_v1  ;;  %3137 = vmatpush3.msk.msra.mxu1 %vm3800_vm0, %v5191_v4 }
  0xea   : > { %3112 = vmatpush3.msra.mxu0 %v3960_v54  ;;  %3138 = vmatprep.subr.mxu1 %v3600_v1 }
  0xeb   : > { %3113 = vmatprep.subr.mxu0 %v3600_v1  ;;  %3139 = vmatpush3.msk.msra.mxu1 %vm3817_vm1, %v5191_v4 }
  0xec   : > { %3114 = vmatpush3.msra.mxu0 %v4008_v3  ;;  %3140 = vmatprep.subr.mxu1 %v3600_v1 }
  0xed   : > { %3115 = vmatprep.subr.mxu0 %v3600_v1  ;;  %3141 = vmatpush3.msk.msra.mxu1 %vm5209_vm12, %v5191_v4 }
  0xee   : > { %3116 = vmatpush3.msra.mxu0 %v4038_v11  ;;  %3142 = vmatprep.subr.mxu1 %v3600_v1 }
  0xef   : > { %3117 = vmatprep.subr.mxu0 %v3600_v1  ;;  %3143 = vmatpush3.msk.msra.mxu1 %vm3851_vm4, %v5191_v4 }
  0xf0   : > { %3118 = vmatpush3.msra.mxu0 %v4040_v14  ;;  %3144 = vmatprep.subr.mxu1 %v3600_v1 }
  0xf1   : > { %3119 = vmatprep.subr.mxu0 %v3600_v1  ;;  %3145 = vmatpush3.msk.msra.mxu1 %vm5200_vm3, %v5191_v4 }
  0xf2   : > { %3120 = vmatpush3.msra.mxu0 %v4081_v39  ;;  %3146 = vmatprep.subr.mxu1 %v3600_v1 }
  0xf3   : > { %3121 = vmatprep.subr.mxu0 %v3600_v1  ;;  %3147 = vmatpush3.msk.msra.mxu1 %vm5193_vm2, %v5191_v4 }
  0xf4   : > { %3122 = vmatpush3.msra.mxu0 %v4116_v59  ;;  %3148 = vmatprep.subr.mxu1 %v3600_v1 }
  0xf5   : > { %3123 = vmatprep.subr.mxu0 %v3600_v1  ;;  %3149 = vmatpush3.msk.msra.mxu1 %vm5194_vm9, %v5191_v4 }
  0xf6   : > { %3124 = vmatpush3.msra.mxu0 %v4146_v19  ;;  %3150 = vmatprep.subr.mxu1 %v3600_v1 }
  0xf7   : > { %3125 = vmatprep.subr.mxu0 %v3600_v1  ;;  %3151 = vmatpush3.msk.msra.mxu1 %vm5199_vm5, %v5191_v4 }
  0xf8   : > { %3126 = vmatpush3.msra.mxu0 %v4148_v20  ;;  %3152 = vmatprep.subr.mxu1 %v3600_v1 }
  0xf9   : > { %3127 = vmatprep.subr.mxu0 %v3600_v1  ;;  %3153 = vmatpush3.msk.msra.mxu1 %vm5196_vm7, %v5191_v4 }
  0xfa   : > { %3128 = vmatpush3.msra.mxu0 %v4165_v15  ;;  %3154 = vmatprep.subr.mxu1 %v3600_v1 }
  0xfb   : > { %3129 = vmatprep.subr.mxu0 %v3600_v1  ;;  %3155 = vmatpush3.msk.msra.mxu1 %vm4004_vm11, %v5191_v4 }
  0xfc   : > { %3130 = vmatpush3.msra.mxu0 %v4177_v44  ;;  %3131 = vmatprep.mubr.msk.f32.mxu0 %vm5197_vm13, %v3600_v1 }
  0xfd   : > { %3156 = vmatprep.subr.mxu1 %v3600_v1  ;;  %3132 = vmatmul.mubr.f32.vlgmr.msra.gmra.mxu0 %v4492_v6 }
  0xfe   : > { %3157 = vmatpush3.msk.msra.mxu1 %vm4031_vm15, %v5191_v4  ;;  %3169 = vmatprep.subr.mxu0 %v3600_v1 }
  0xff   : > { %3158 = vmatprep.subr.mxu1 %v3600_v1  ;;  %3170 = vmatpush3.msra.mxu0 %v3856_v28 }
 0x100   : > { %3159 = vmatpush3.msk.msra.mxu1 %vm4062_vm14, %v5191_v4  ;;  %3171 = vmatprep.subr.mxu0 %v3600_v1 }
 0x101   : > { %3160 = vmatprep.subr.mxu1 %v3600_v1  ;;  %3172 = vmatpush3.msra.mxu0 %v3876_v32 }
 0x102   : > { %3161 = vmatpush3.msk.msra.mxu1 %vm4076_vm6, %v5191_v4  ;;  %3173 = vmatprep.subr.mxu0 %v3600_v1 }
 0x103   : > { %3162 = vmatprep.subr.mxu1 %v3600_v1  ;;  %3174 = vmatpush3.msra.mxu0 %v3896_v37 }
 0x104   : > { %3163 = vmatpush3.msk.msra.mxu1 %vm4098_vm10, %v5191_v4  ;;  %3175 = vmatprep.subr.mxu0 %v3600_v1  ;;  %vm5211_vm10 = vnez %v5150_v13 }
 0x105   : > { %3164 = vmatprep.subr.mxu1 %v3600_v1  ;;  %3176 = vmatpush3.msra.mxu0 %v3909_v41 }
 0x106   : > { %3165 = vmatpush3.msk.msra.mxu1 %vm4112_vm8, %v5191_v4  ;;  %3166 = vmatprep.mubr.msk.f32.mxu1 %vm5197_vm13, %v3600_v1 }
 0x107   : > { %3177 = vmatprep.subr.mxu0 %v3600_v1  ;;  %3167 = vmatmul.mubr.f32.vlgmr.msra.gmra.mxu1 %v5210_v34  ;;  %v5216_v34 = vld [vmem:[#allocation10_spill] sm:$0xff] }
 0x108   : > { %3178 = vmatpush3.msra.mxu0 %v3929_v46  ;;  %3204 = vmatprep.subr.mxu1 %v3600_v1 }
 0x109   : > { %3179 = vmatprep.subr.mxu0 %v3600_v1  ;;  %3205 = vmatpush3.msk.msra.mxu1 %vm5211_vm10, %v5191_v4 }
 0x10a   : > { %3180 = vmatpush3.msra.mxu0 %v3941_v49  ;;  %3206 = vmatprep.subr.mxu1 %v3600_v1 }
 0x10b   : > { %3181 = vmatprep.subr.mxu0 %v3600_v1  ;;  %3207 = vmatpush3.msk.msra.mxu1 %vm3800_vm0, %v5191_v4 }
 0x10c   : > { %3182 = vmatpush3.msra.mxu0 %v3988_v62  ;;  %3208 = vmatprep.subr.mxu1 %v3600_v1 }
 0x10d   : > { %3183 = vmatprep.subr.mxu0 %v3600_v1  ;;  %3209 = vmatpush3.msk.msra.mxu1 %vm3817_vm1, %v5191_v4 }
 0x10e   : > { %3184 = vmatpush3.msra.mxu0 %v4036_v10  ;;  %3210 = vmatprep.subr.mxu1 %v3600_v1 }
 0x10f   : > { %3185 = vmatprep.subr.mxu0 %v3600_v1  ;;  %3211 = vmatpush3.msk.msra.mxu1 %vm5209_vm12, %v5191_v4 }
 0x110   : > { %3186 = vmatpush3.msra.mxu0 %v4067_v26  ;;  %3212 = vmatprep.subr.mxu1 %v3600_v1 }
 0x111   : > { %3187 = vmatprep.subr.mxu0 %v3600_v1  ;;  %3213 = vmatpush3.msk.msra.mxu1 %vm3851_vm4, %v5191_v4 }
 0x112   : > { %3188 = vmatpush3.msra.mxu0 %v4070_v30  ;;  %3214 = vmatprep.subr.mxu1 %v3600_v1 }
 0x113   : > { %3189 = vmatprep.subr.mxu0 %v3600_v1  ;;  %3215 = vmatpush3.msk.msra.mxu1 %vm5200_vm3, %v5191_v4 }
 0x114   : > { %3190 = vmatpush3.msra.mxu0 %v4110_v55  ;;  %3216 = vmatprep.subr.mxu1 %v3600_v1 }
 0x115   : > { %3191 = vmatprep.subr.mxu0 %v3600_v1  ;;  %3217 = vmatpush3.msk.msra.mxu1 %vm5193_vm2, %v5191_v4 }
 0x116   : > { %3192 = vmatpush3.msra.mxu0 %v4138_v8  ;;  %3218 = vmatprep.subr.mxu1 %v3600_v1 }
 0x117   : > { %3193 = vmatprep.subr.mxu0 %v3600_v1  ;;  %3219 = vmatpush3.msk.msra.mxu1 %vm5194_vm9, %v5191_v4 }
 0x118   : > { %3194 = vmatpush3.msra.mxu0 %v4172_v18  ;;  %3220 = vmatprep.subr.mxu1 %v3600_v1 }
 0x119   : > { %3195 = vmatprep.subr.mxu0 %v3600_v1  ;;  %3221 = vmatpush3.msk.msra.mxu1 %vm5199_vm5, %v5191_v4 }
 0x11a   : > { %3196 = vmatpush3.msra.mxu0 %v4175_v50  ;;  %3222 = vmatprep.subr.mxu1 %v3600_v1 }
 0x11b   : > { %3197 = vmatprep.subr.mxu0 %v3600_v1  ;;  %3223 = vmatpush3.msk.msra.mxu1 %vm5196_vm7, %v5191_v4 }
 0x11c   : > { %3198 = vmatpush3.msra.mxu0 %v4185_v63  ;;  %3224 = vmatprep.subr.mxu1 %v3600_v1 }
 0x11d   : > { %3199 = vmatprep.subr.mxu0 %v3600_v1  ;;  %3225 = vmatpush3.msk.msra.mxu1 %vm4004_vm11, %v5191_v4 }
 0x11e   : > { %3200 = vmatpush3.msra.mxu0 %v4203_v56  ;;  %3201 = vmatprep.mubr.msk.f32.mxu0 %vm5197_vm13, %v3600_v1 }
 0x11f   : > { %3226 = vmatprep.subr.mxu1 %v3600_v1  ;;  %3202 = vmatmul.mubr.f32.vlgmr.msra.gmra.mxu0 %v4477_v53 }
 0x120   : > { %3227 = vmatpush3.msk.msra.mxu1 %vm4031_vm15, %v5191_v4  ;;  %3239 = vmatprep.subr.mxu0 %v3600_v1 }
 0x121   : > { %3228 = vmatprep.subr.mxu1 %v3600_v1  ;;  %3240 = vmatpush3.msk.msra.mxu0 %vm5211_vm10, %v5191_v4  ;;  %vm5212_vm10 = vnez %v5185_v5 }
 0x122   : > { %3229 = vmatpush3.msk.msra.mxu1 %vm4062_vm14, %v5191_v4  ;;  %3241 = vmatprep.subr.mxu0 %v3600_v1 }
 0x123   : > { %3230 = vmatprep.subr.mxu1 %v3600_v1  ;;  %3242 = vmatpush3.msk.msra.mxu0 %vm3800_vm0, %v5191_v4 }
 0x124   : > { %3231 = vmatpush3.msk.msra.mxu1 %vm4076_vm6, %v5191_v4  ;;  %3243 = vmatprep.subr.mxu0 %v3600_v1 }
 0x125   : > { %3232 = vmatprep.subr.mxu1 %v3600_v1  ;;  %3244 = vmatpush3.msk.msra.mxu0 %vm3817_vm1, %v5191_v4 }
 0x126   : > { %3233 = vmatpush3.msk.msra.mxu1 %vm5212_vm10, %v5191_v4  ;;  %3245 = vmatprep.subr.mxu0 %v3600_v1 }
 0x127   : > { %3234 = vmatprep.subr.mxu1 %v3600_v1  ;;  %3246 = vmatpush3.msk.msra.mxu0 %vm5209_vm12, %v5191_v4 }
 0x128   : > { %3235 = vmatpush3.msk.msra.mxu1 %vm4112_vm8, %v5191_v4  ;;  %3236 = vmatprep.mubr.msk.f32.mxu1 %vm5197_vm13, %v3600_v1 }
 0x129   : > { %3247 = vmatprep.subr.mxu0 %v3600_v1  ;;  %3237 = vmatmul.mubr.f32.vlgmr.msra.gmra.mxu1 %v4477_v53  ;;  %v5213_v53 = vld [vmem:[#allocation14_spill] sm:$0xff] }
 0x12a   : > { %3248 = vmatpush3.msk.msra.mxu0 %vm3851_vm4, %v5191_v4  ;;  %3274 = vmatprep.subr.mxu1 %v3600_v1  ;;  %v4789_v6 = vand.u32 4294901760, %v5213_v53 }
 0x12b   : > { %3249 = vmatprep.subr.mxu0 %v3600_v1  ;;  %3275 = vmatpush3.msra.mxu1 %v3916_v43  ;;  %v5214_v43 = vld [vmem:[#allocation8_spill] sm:$0xff] }
 0x12c   : > { %3250 = vmatpush3.msk.msra.mxu0 %vm5200_vm3, %v5191_v4  ;;  %3276 = vmatprep.subr.mxu1 %v3600_v1  ;;  %v4809_v12 = vsub.f32 %v5213_v53, %v4789_v6 }
 0x12d   : > { %3251 = vmatprep.subr.mxu0 %v3600_v1  ;;  %3277 = vmatpush3.msra.mxu1 %v3936_v47  ;;  %v5215_v47 = vld [vmem:[#allocation9_spill] sm:$0xff] }
 0x12e   : > { %3252 = vmatpush3.msk.msra.mxu0 %vm5193_vm2, %v5191_v4  ;;  %3278 = vmatprep.subr.mxu1 %v3600_v1  ;;  %v1667_v53 = vand.u32 4294901760, %v4809_v12 }
 0x12f   : > { %3253 = vmatprep.subr.mxu0 %v3600_v1  ;;  %3279 = vmatpush3.msra.mxu1 %v5214_v43  ;;  %v5217_v43 = vld [vmem:[#allocation11_spill] sm:$0xff] }
 0x130   : > { %3254 = vmatpush3.msk.msra.mxu0 %vm5194_vm9, %v5191_v4  ;;  %3280 = vmatprep.subr.mxu1 %v3600_v1 }
 0x131   : > { %3255 = vmatprep.subr.mxu0 %v3600_v1  ;;  %3281 = vmatpush3.msra.mxu1 %v5215_v47  ;;  %v5218_v47 = vld [vmem:[#allocation12_spill] sm:$0xff] }
 0x132   : > { %3256 = vmatpush3.msk.msra.mxu0 %vm5199_vm5, %v5191_v4  ;;  %3282 = vmatprep.subr.mxu1 %v3600_v1 }
 0x133   : > { %3257 = vmatprep.subr.mxu0 %v3600_v1  ;;  %3283 = vmatpush3.msra.mxu1 %v5216_v34 }
 0x134   : > { %3258 = vmatpush3.msk.msra.mxu0 %vm5196_vm7, %v5191_v4  ;;  %3284 = vmatprep.subr.mxu1 %v3600_v1 }
 0x135   : > { %3259 = vmatprep.subr.mxu0 %v3600_v1  ;;  %3285 = vmatpush3.msra.mxu1 %v5217_v43  ;;  %v5219_v43 = vld [vmem:[#allocation13_spill] sm:$0xff] }
 0x136   : > { %3260 = vmatpush3.msk.msra.mxu0 %vm4004_vm11, %v5191_v4  ;;  %3286 = vmatprep.subr.mxu1 %v3600_v1 }
 0x137   : > { %3261 = vmatprep.subr.mxu0 %v3600_v1  ;;  %3287 = vmatpush3.msra.mxu1 %v5218_v47  ;;  %v387_v34 = vpop.f32.mrf.mxu0  ;;  %v1668_v47 = vsub.f32 %v4809_v12, %v1667_v53 }
 0x138   : > { %3262 = vmatpush3.msk.msra.mxu0 %vm4031_vm15, %v5191_v4  ;;  %3288 = vmatprep.subr.mxu1 %v3600_v1 }
 0x139   : > { %3263 = vmatprep.subr.mxu0 %v3600_v1  ;;  %3289 = vmatpush3.msra.mxu1 %v5219_v43  ;;  %v2853_v56 = vpop.f32.mrf.mxu0 }
 0x13a   : > { %3264 = vmatpush3.msk.msra.mxu0 %vm4062_vm14, %v5191_v4  ;;  %3290 = vmatprep.subr.mxu1 %v3600_v1  ;;  %v1669_v56 = vand.u32 4294901760, %v1668_v47 }
 0x13b   : > { %3265 = vmatprep.subr.mxu0 %v3600_v1  ;;  %3291 = vmatpush3.msra.mxu1 %v5207_v17 }
 0x13c   : > { %3266 = vmatpush3.msk.msra.mxu0 %vm4076_vm6, %v5191_v4  ;;  %3292 = vmatprep.subr.mxu1 %v3600_v1 }
 0x13d   : > { %3267 = vmatprep.subr.mxu0 %v3600_v1  ;;  %3293 = vmatpush3.msra.mxu1 %v5208_v2 }
 0x13e   : > { %3268 = vmatpush3.msk.msra.mxu0 %vm5212_vm10, %v5191_v4  ;;  %3294 = vmatprep.subr.mxu1 %v3600_v1 }
 0x13f   : > { %3269 = vmatprep.subr.mxu0 %v3600_v1  ;;  %3295 = vmatpush3.msra.mxu1 %v4181_v60  ;;  %v538_v17 = vpop.f32.mrf.mxu1 }
 0x140   : > { %3270 = vmatpush3.msk.msra.mxu0 %vm4112_vm8, %v5191_v4  ;;  %3296 = vmatprep.subr.mxu1 %v3600_v1  ;;  %v539_v43 = vadd.f32 %v538_v17, %v387_v34  ;;  %vm5220_vm8 = vnez %v5150_v13 }
 0x141   : > { %3271 = vmatprep.mubr.msk.f32.mxu0 %vm5197_vm13, %v3600_v1  ;;  %3297 = vmatpush3.msra.mxu1 %v4195_v7  ;;  %v2888_v2 = vpop.f32.mrf.mxu1 }
 0x142   : > { %3309 = vmatprep.subr.mxu0 %v3600_v1  ;;  %3272 = vmatmul.mubr.f32.vlgmr.msra.gmra.mxu0 %v1669_v56 }
 0x143   : > { %3298 = vmatprep.subr.mxu1 %v3600_v1  ;;  %3310 = vmatpush3.msra.mxu0 %v3821_v22 }
 0x144   : > { %3299 = vmatpush3.msra.mxu1 %v4211_v48  ;;  %3311 = vmatprep.subr.mxu0 %v3600_v1 }
 0x145   : > { %3300 = vmatprep.subr.mxu1 %v3600_v1  ;;  %3312 = vmatpush3.msra.mxu0 %v3839_v25 }
 0x146   : > { %3301 = vmatpush3.msra.mxu1 %v4221_v51  ;;  %3313 = vmatprep.subr.mxu0 %v3600_v1 }
 0x147   : > { %3302 = vmatprep.subr.mxu1 %v3600_v1  ;;  %3314 = vmatpush3.msra.mxu0 %v3858_v29 }
 0x148   : > { %3303 = vmatpush3.msra.mxu1 %v4228_v40  ;;  %3315 = vmatprep.subr.mxu0 %v3600_v1 }
 0x149   : > { %3304 = vmatprep.subr.mxu1 %v3600_v1  ;;  %3316 = vmatpush3.msra.mxu0 %v3878_v33 }
 0x14a   : > { %3305 = vmatpush3.msra.mxu1 %v4234_v61  ;;  %3306 = vmatprep.mubr.msk.f32.mxu1 %vm5197_vm13, %v3600_v1 }
 0x14b   : > { %3317 = vmatprep.subr.mxu0 %v3600_v1  ;;  %3307 = vmatmul.mubr.f32.vlgmr.msra.gmra.mxu1 %v4789_v6 }
 0x14c   : > { %3318 = vmatpush3.msra.mxu0 %v3898_v38  ;;  %3344 = vmatprep.subr.mxu1 %v3600_v1 }
 0x14d   : > { %3319 = vmatprep.subr.mxu0 %v3600_v1  ;;  %3345 = vmatpush3.msk.msra.mxu1 %vm5220_vm8, %v5191_v4 }
 0x14e   : > { %3320 = vmatpush3.msra.mxu0 %v3911_v42  ;;  %3346 = vmatprep.subr.mxu1 %v3600_v1 }
 0x14f   : > { %3321 = vmatprep.subr.mxu0 %v3600_v1  ;;  %3347 = vmatpush3.msk.msra.mxu1 %vm3800_vm0, %v5191_v4 }
 0x150   : > { %3322 = vmatpush3.msra.mxu0 %v3960_v54  ;;  %3348 = vmatprep.subr.mxu1 %v3600_v1 }
 0x151   : > { %3323 = vmatprep.subr.mxu0 %v3600_v1  ;;  %3349 = vmatpush3.msk.msra.mxu1 %vm3817_vm1, %v5191_v4 }
 0x152   : > { %3324 = vmatpush3.msra.mxu0 %v4008_v3  ;;  %3350 = vmatprep.subr.mxu1 %v3600_v1 }
 0x153   : > { %3325 = vmatprep.subr.mxu0 %v3600_v1  ;;  %3351 = vmatpush3.msk.msra.mxu1 %vm5209_vm12, %v5191_v4 }
 0x154   : > { %3326 = vmatpush3.msra.mxu0 %v4038_v11  ;;  %3352 = vmatprep.subr.mxu1 %v3600_v1 }
 0x155   : > { %3327 = vmatprep.subr.mxu0 %v3600_v1  ;;  %3353 = vmatpush3.msk.msra.mxu1 %vm3851_vm4, %v5191_v4 }
 0x156   : > { %3328 = vmatpush3.msra.mxu0 %v4040_v14  ;;  %3354 = vmatprep.subr.mxu1 %v3600_v1 }
 0x157   : > { %3329 = vmatprep.subr.mxu0 %v3600_v1  ;;  %3355 = vmatpush3.msk.msra.mxu1 %vm5200_vm3, %v5191_v4  ;;  %v642_v22 = vpop.f32.mrf.mxu0 }
 0x158   : > { %3330 = vmatpush3.msra.mxu0 %v4081_v39  ;;  %3356 = vmatprep.subr.mxu1 %v3600_v1  ;;  %v643_v25 = vadd.f32 %v642_v22, %v539_v43 }
 0x159   : > { %3331 = vmatprep.subr.mxu0 %v3600_v1  ;;  %3357 = vmatpush3.msk.msra.mxu1 %vm5193_vm2, %v5191_v4  ;;  %v2923_v29 = vpop.f32.mrf.mxu0 }
 0x15a   : > { %3332 = vmatpush3.msra.mxu0 %v4116_v59  ;;  %3358 = vmatprep.subr.mxu1 %v3600_v1 }
 0x15b   : > { %3333 = vmatprep.subr.mxu0 %v3600_v1  ;;  %3359 = vmatpush3.msk.msra.mxu1 %vm5194_vm9, %v5191_v4 }
 0x15c   : > { %3334 = vmatpush3.msra.mxu0 %v4146_v19  ;;  %3360 = vmatprep.subr.mxu1 %v3600_v1 }
 0x15d   : > { %3335 = vmatprep.subr.mxu0 %v3600_v1  ;;  %3361 = vmatpush3.msk.msra.mxu1 %vm5199_vm5, %v5191_v4 }
 0x15e   : > { %3336 = vmatpush3.msra.mxu0 %v4148_v20  ;;  %3362 = vmatprep.subr.mxu1 %v3600_v1 }
 0x15f   : > { %3337 = vmatprep.subr.mxu0 %v3600_v1  ;;  %3363 = vmatpush3.msk.msra.mxu1 %vm5196_vm7, %v5191_v4 }
 0x160   : > { %3338 = vmatpush3.msra.mxu0 %v4165_v15  ;;  %3364 = vmatprep.subr.mxu1 %v3600_v1 }
 0x161   : > { %3339 = vmatprep.subr.mxu0 %v3600_v1  ;;  %3365 = vmatpush3.msk.msra.mxu1 %vm4004_vm11, %v5191_v4  ;;  %v731_v33 = vpop.f32.mrf.mxu1 }
 0x162   : > { %3340 = vmatpush3.msra.mxu0 %v4177_v44  ;;  %3341 = vmatprep.mubr.msk.f32.mxu0 %vm5197_vm13, %v3600_v1  ;;  %v732_v38 = vadd.f32 %v731_v33, %v643_v25 }
 0x163   : > { %3366 = vmatprep.subr.mxu1 %v3600_v1  ;;  %3342 = vmatmul.mubr.f32.vlgmr.msra.gmra.mxu0 %v4809_v12  ;;  %v2958_v15 = vpop.f32.mrf.mxu1 }
 0x164   : > { %3367 = vmatpush3.msk.msra.mxu1 %vm4031_vm15, %v5191_v4  ;;  %3379 = vmatprep.subr.mxu0 %v3600_v1 }
 0x165   : > { %3368 = vmatprep.subr.mxu1 %v3600_v1  ;;  %3380 = vmatpush3.msra.mxu0 %v3856_v28 }
 0x166   : > { %3369 = vmatpush3.msk.msra.mxu1 %vm4062_vm14, %v5191_v4  ;;  %3381 = vmatprep.subr.mxu0 %v3600_v1  ;;  %vm5221_vm14 = vnez %v5187_v58 }
 0x167   : > { %3370 = vmatprep.subr.mxu1 %v3600_v1  ;;  %3382 = vmatpush3.msra.mxu0 %v3876_v32 }
 0x168   : > { %3371 = vmatpush3.msk.msra.mxu1 %vm4076_vm6, %v5191_v4  ;;  %3383 = vmatprep.subr.mxu0 %v3600_v1 }
 0x169   : > { %3372 = vmatprep.subr.mxu1 %v3600_v1  ;;  %3384 = vmatpush3.msra.mxu0 %v3896_v37 }
 0x16a   : > { %3373 = vmatpush3.msk.msra.mxu1 %vm5212_vm10, %v5191_v4  ;;  %3385 = vmatprep.subr.mxu0 %v3600_v1 }
 0x16b   : > { %3374 = vmatprep.subr.mxu1 %v3600_v1  ;;  %3386 = vmatpush3.msra.mxu0 %v3909_v41 }
 0x16c   : > { %3375 = vmatpush3.msk.msra.mxu1 %vm5221_vm14, %v5191_v4  ;;  %3376 = vmatprep.mubr.msk.f32.mxu1 %vm5197_vm13, %v3600_v1 }
 0x16d   : > { %3387 = vmatprep.subr.mxu0 %v3600_v1  ;;  %3377 = vmatmul.mubr.f32.vlgmr.msra.gmra.mxu1 %v1667_v53 }
 0x16e   : > { %3388 = vmatpush3.msra.mxu0 %v3929_v46  ;;  %3414 = vmatprep.subr.mxu1 %v3600_v1 }
 0x16f   : > { %3389 = vmatprep.subr.mxu0 %v3600_v1  ;;  %3415 = vmatpush3.msk.msra.mxu1 %vm5220_vm8, %v5191_v4 }
 0x170   : > { %3390 = vmatpush3.msra.mxu0 %v3941_v49  ;;  %3416 = vmatprep.subr.mxu1 %v3600_v1 }
 0x171   : > { %3391 = vmatprep.subr.mxu0 %v3600_v1  ;;  %3417 = vmatpush3.msk.msra.mxu1 %vm3800_vm0, %v5191_v4  ;;  %vm5223_vm0 = vnez %v5180_v23 }
 0x172   : > { %3392 = vmatpush3.msra.mxu0 %v3988_v62  ;;  %3418 = vmatprep.subr.mxu1 %v3600_v1 }
 0x173   : > { %3393 = vmatprep.subr.mxu0 %v3600_v1  ;;  %3419 = vmatpush3.msk.msra.mxu1 %vm3817_vm1, %v5191_v4 }
 0x174   : > { %3394 = vmatpush3.msra.mxu0 %v4036_v10  ;;  %3420 = vmatprep.subr.mxu1 %v3600_v1 }
 0x175   : > { %3395 = vmatprep.subr.mxu0 %v3600_v1  ;;  %3421 = vmatpush3.msk.msra.mxu1 %vm5209_vm12, %v5191_v4 }
 0x176   : > { %3396 = vmatpush3.msra.mxu0 %v4067_v26  ;;  %3422 = vmatprep.subr.mxu1 %v3600_v1 }
 0x177   : > { %3397 = vmatprep.subr.mxu0 %v3600_v1  ;;  %3423 = vmatpush3.msk.msra.mxu1 %vm3851_vm4, %v5191_v4 }
 0x178   : > { %3398 = vmatpush3.msra.mxu0 %v4070_v30  ;;  %3424 = vmatprep.subr.mxu1 %v3600_v1 }
 0x179   : > { %3399 = vmatprep.subr.mxu0 %v3600_v1  ;;  %3425 = vmatpush3.msk.msra.mxu1 %vm5200_vm3, %v5191_v4  ;;  %v850_v13 = vpop.f32.mrf.mxu0  ;;  %vm2249_vm3 = vcmask 31744  }
 0x17a   : > { %3400 = vmatpush3.msra.mxu0 %v4110_v55  ;;  %3426 = vmatprep.subr.mxu1 %v3600_v1  ;;  %v851_v16 = vadd.f32 %v850_v13, %v732_v38 }
 0x17b   : > { %3401 = vmatprep.subr.mxu0 %v3600_v1  ;;  %3427 = vmatpush3.msk.msra.mxu1 %vm5193_vm2, %v5191_v4  ;;  %v2993_v21 = vpop.f32.mrf.mxu0 }
 0x17c   : > { %3402 = vmatpush3.msra.mxu0 %v4138_v8  ;;  %3428 = vmatprep.subr.mxu1 %v3600_v1 }
 0x17d   : > { %3403 = vmatprep.subr.mxu0 %v3600_v1  ;;  %3429 = vmatpush3.msk.msra.mxu1 %vm5194_vm9, %v5191_v4 }
 0x17e   : > { %3404 = vmatpush3.msra.mxu0 %v4172_v18  ;;  %3430 = vmatprep.subr.mxu1 %v3600_v1 }
 0x17f   : > { %3405 = vmatprep.subr.mxu0 %v3600_v1  ;;  %3431 = vmatpush3.msk.msra.mxu1 %vm5199_vm5, %v5191_v4 }
 0x180   : > { %3406 = vmatpush3.msra.mxu0 %v4175_v50  ;;  %3432 = vmatprep.subr.mxu1 %v3600_v1 }
 0x181   : > { %3407 = vmatprep.subr.mxu0 %v3600_v1  ;;  %3433 = vmatpush3.msk.msra.mxu1 %vm5196_vm7, %v5191_v4 }
 0x182   : > { %3408 = vmatpush3.msra.mxu0 %v4185_v63  ;;  %3434 = vmatprep.subr.mxu1 %v3600_v1 }
 0x183   : > { %3409 = vmatprep.subr.mxu0 %v3600_v1  ;;  %3435 = vmatpush3.msk.msra.mxu1 %vm4004_vm11, %v5191_v4  ;;  %v937_v24 = vpop.f32.mrf.mxu1 }
 0x184   : > { %3410 = vmatpush3.msra.mxu0 %v5222_v27  ;;  %3411 = vmatprep.mubr.msk.f32.mxu0 %vm5197_vm13, %v3600_v1  ;;  %v938_v28 = vadd.f32 %v937_v24, %v851_v16 }
 0x185   : > { %3436 = vmatprep.subr.mxu1 %v3600_v1  ;;  %3412 = vmatmul.mubr.f32.vlgmr.msra.gmra.mxu0 %v4789_v6  ;;  %v3028_v31 = vpop.f32.mrf.mxu1 }
 0x186   : > { %3437 = vmatpush3.msk.msra.mxu1 %vm4031_vm15, %v5191_v4  ;;  %3446 = vmatprep.mubr.msk.f32.mxu1 %vm5197_vm13, %v3600_v1  ;;  %v2230_v9 = vsub.f32 1.0, %v938_v28 }
 0x187   : > { %3438 = vmatprep.subr.mxu1 %v3600_v1 }
 0x188   : > { %3439 = vmatpush3.msk.msra.mxu1 %vm5223_vm0, %v5191_v4 }
 0x189   : > { %3440 = vmatprep.subr.mxu1 %v3600_v1 }
 0x18a   : > { %3441 = vmatpush3.msk.msra.mxu1 %vm4076_vm6, %v5191_v4 }
 0x18b   : > { %3442 = vmatprep.subr.mxu1 %v3600_v1 }
 0x18c   : > { %3443 = vmatpush3.msk.msra.mxu1 %vm5212_vm10, %v5191_v4 }
 0x18d   : > { %3444 = vmatprep.subr.mxu1 %v3600_v1 }
 0x18e   : > { %3445 = vmatpush3.msk.msra.mxu1 %vm5221_vm14, %v5191_v4 }
 0x18f   : > { %3447 = vmatmul.mubr.f32.vlgmr.msra.gmra.mxu1 %v4789_v6 }
 0x19c   : > { %v1029_v32 = vpop.f32.mrf.mxu0 }
 0x19e   : > { %v3063_v36 = vpop.f32.mrf.mxu0 }
 0x1a5   : > { %v1180_v37 = vpop.f32.mrf.mxu1 }
 0x1a6   : > { %v1181_v41 = vadd.f32 %v1180_v37, %v1029_v32 }
 0x1a7   : > { %v3098_v42 = vpop.f32.mrf.mxu1 }
 0x1bd   : > { %v1284_v45 = vpop.f32.mrf.mxu0 }
 0x1be   : > { %v1285_v46 = vadd.f32 %v1284_v45, %v1181_v41 }
 0x1bf   : > { %v3133_v49 = vpop.f32.mrf.mxu0 }
 0x1c7   : > { %v1373_v51 = vpop.f32.mrf.mxu1 }
 0x1c8   : > { %v1374_v52 = vadd.f32 %v1373_v51, %v1285_v46 }
 0x1c9   : > { %v3168_v54 = vpop.f32.mrf.mxu1 }
 0x1df   : > { %v1492_v57 = vpop.f32.mrf.mxu0 }
 0x1e0   : > { %v1493_v62 = vadd.f32 %v1492_v57, %v1374_v52 }
 0x1e1   : > { %v3203_v1 = vpop.f32.mrf.mxu0 }
 0x1e9   : > { %v1579_v63 = vpop.f32.mrf.mxu1 }
 0x1ea   : > { %v1580_v0 = vadd.f32 %v1579_v63, %v1493_v62 }
 0x1eb   : > { %v3238_v3 = vpop.f32.mrf.mxu1 }
 0x1ec   : > { %v2225_v10 = vadd.f32 %v1580_v0, %v938_v28  ;;  %v2231_v11 = vsub.f32 1.0, %v1580_v0 }
 0x1ee   : > { %v2232_v14 = vmul.f32 %v2231_v11, %v2230_v9 }
 0x1f0   : > { %3496 = vrcp.f32 %v2232_v14 }
 0x1fd   : > { %v3497_v6 = vpop.eup %3496 }
 0x202   : > { %v1671_v18 = vpop.f32.mrf.mxu0 }
 0x204   : > { %v3273_v23 = vpop.f32.mrf.mxu0 }
 0x20b   : > { %v1822_v26 = vpop.f32.mrf.mxu1 }
 0x20c   : > { %v1823_v59 = vadd.f32 %v1822_v26, %v1671_v18 }
 0x20d   : > { %v3308_v30 = vpop.f32.mrf.mxu1 }
 0x223   : > { %v1926_v35 = vpop.f32.mrf.mxu0 }
 0x224   : > { %v1927_v4 = vadd.f32 %v1926_v35, %v1823_v59 }
 0x225   : > { %v3343_v39 = vpop.f32.mrf.mxu0 }
 0x22d   : > { %v2015_v44 = vpop.f32.mrf.mxu1 }
 0x22e   : > { %v2016_v8 = vadd.f32 %v2015_v44, %v1927_v4 }
 0x22f   : > { %v3378_v5 = vpop.f32.mrf.mxu1 }
 0x245   : > { %v2134_v55 = vpop.f32.mrf.mxu0 }
 0x246   : > { %v2135_v19 = vadd.f32 %v2134_v55, %v2016_v8 }
 0x247   : > { %v3413_v58 = vpop.f32.mrf.mxu0 }
 0x24f   : > { %v2221_v20 = vpop.f32.mrf.mxu1 }
 0x250   : > { %v2222_v48 = vadd.f32 %v2221_v20, %v2135_v19 }
 0x251   : > { %v3448_v50 = vpop.f32.mrf.mxu1 }
 0x252   : > { %v2226_v60 = vmul.f32 2.0, %v2222_v48 }
 0x254   : > { %v2227_v7 = vsub.f32 %v2225_v10, %v2226_v60 }
 0x256   : > { %v2228_v40 = vmax.f32 %v2227_v7, 0.0 }
 0x258   : > { %v2229_v61 = vmul.f32 2.0, %v2228_v40 }
 0x25a   : > { %v2234_v12 = vmul.f32 %v3497_v6, %v2229_v61 }
 0x25c   : > { %v2235_v53 = vadd.f32 1.0, %v2234_v12 }
 0x25e   : > { %v2236_v34 = vadd.f32 1e-07, %v2235_v53 }
 0x260   : > { %v2237_v47 = vmul.f32 %v2236_v34, %v2236_v34 }
 0x262   : > { %v2510_v56 = vadd.f32 -1.0, %v2237_v47 }
 0x264   : > { %3498 = vrsqrt.f32 %v2510_v56  ;;  %vm2241_vm12 = vcmp.eq.f32.partialorder %v2510_v56, inf  ;;  %v2244_v2 = vand.u32 2147483648, %v2510_v56  ;;  %vm2243_vm1 = vcmp.eq.f32.partialorder %v2510_v56, 0.0 }
 0x271   : > { %v3499_v17 = vpop.eup %3498 }
 0x272   : > { %v2240_v43 = vmul.f32 %v3499_v17, %v2510_v56 }
 0x274   : > { %v2242_v22 = vsel %vm2241_vm12, %v2510_v56, %v2240_v43 }
 0x275   : > { %v2245_v25 = vsel %vm2243_vm1, %v2244_v2, %v2242_v22 }
 0x276   : > { %v2246_v29 = vadd.f32 %v2245_v25, %v2236_v34 }
 0x278   : > { %3500 = vlog2.f32 %v2246_v29 }
 0x285   : > { %v3501_v33 = vpop.eup %3500 }
 0x286   : > { %v2248_v38 = vmul.f32 0.6931472, %v3501_v33 }
 0x288   : > { %2250 = vst.msk [vmem:[%s195_s25] sm:$0xff] %vm2249_vm3, %v2248_v38 }
 0x289 PF: > { %p15_p8 = scmp.ge.s32.totalorder %s3640_s14, 4   ;;  %s5224_s9 = smov %s3588_s10 }
 0x28a   : > { %s5225_s10 = smov %s3592_s11  ;;  %s5226_s11 = smov %s3650_s17 }
 0x28b   : > { %s5227_s12 = smov %s3640_s14  ;;  %17 = sbr.rel (!%p15_p8) target bundleno = 5 (0x5), region = 81 }
 0x290   :  { %2270 = vsyncpa [#allocation3], 1 }
 0x291   :  { %2272 = vsyncpa [#allocation3 + $0x1], 1 }
 0x292   :  { %2273 = vsyncpa [#allocation5], 1 }
 0x293   :  { %2275 = vsyncpa [#allocation5 + $0x1], 1 }

</bundles_post_ra>
